<compile_context>
chip_gen: v7x
topology: tpu7x:2x2x1
jax: 0.10.0
libtpu: 0.0.40
codegen_flags: <defaults>
</compile_context>

<pallas_src>
import functools

import numpy as np
import jax
import jax.numpy as jnp
from jax.experimental import pallas as pl
from jax.experimental.pallas import tpu as pltpu


def _diversity_mask_kernel(z_ref, out_ref, *, M, D, inv_temp, scale):
    # z_ref: (TB, M*D) block, batch on sublanes.  Upcast once; all arithmetic is f32 VPU.
    z = z_ref[...].astype(jnp.float32)
    zt = z.T                                              # (M*D, TB) -- batch on lanes

    # Per-mask normalized rows, each (D, TB): the D-reduction is a cheap sublane/VALU add.
    # rsqrt(max(ss, eps^2)) == 1 / max(||z||, eps), i.e. F.normalize with eps=1e-12.
    rows = []
    for m in range(M):
        r = zt[m * D:(m + 1) * D, :]                      # (D, TB), static slice
        ss = jnp.sum(r * r, axis=0, keepdims=True)        # (1, TB)
        rows.append(r * jax.lax.rsqrt(jnp.maximum(ss, 1e-24)))

    # exp(sim / temp) for the M*(M-1)/2 unique off-diagonal pairs (sim is symmetric).
    # Each pair is an elementwise multiply over (D, TB) + sublane-add -> lane vector (1, TB),
    # then a single lane-dense exp on the EUP.
    pair = {}
    for m in range(M):
        for n in range(m + 1, M):
            s = jnp.sum(rows[m] * rows[n], axis=0, keepdims=True)   # (1, TB)
            pair[(m, n)] = jnp.exp(s * inv_temp)

    # trans[m] = sum_{n != m} exp(sim[m, n]) ; loss = sum_m log(trans[m]) * scale
    loss = None
    for m in range(M):
        trans = None
        for n in range(M):
            if n == m:
                continue
            p = pair[(m, n) if m < n else (n, m)]
            trans = p if trans is None else trans + p
        lt = jnp.log(trans)
        loss = lt if loss is None else loss + lt

    out_ref[...] = (loss * scale).astype(out_ref.dtype)   # lane-dense (1, TB) store


def _pick_batch_tile(B, M, D, in_itemsize):
    md = M * D
    md_lanes = ((md + 127) // 128) * 128                  # input tile lane padding
    # Per batch row: double-buffered input block + ~4 f32 row-sized copies
    # (upcast, transpose, normalized rows, one transient product) + pair/trans lane vectors.
    per_row = 2 * md_lanes * in_itemsize + 4 * (4 * md + (M * (M - 1)) // 2 + 2 * M)
    budget = 8 * 1024 * 1024        # comfortable headroom under the 16 MiB scoped-VMEM (v5e)
    tb = int(min(B, max(1, budget // max(per_row, 1)), 1024))
    # Prefer >= 4 grid steps once the batch is large enough (pipelining + megacore / v7x 2 TCs).
    if B >= 512:
        quarter = (((B + 3) // 4 + 127) // 128) * 128
        tb = min(tb, quarter)
    if tb < B and tb % 8 != 0:
        tb = max(8, (tb // 8) * 8)   # keep the (TB, M*D) input block sublane-aligned
    return tb


def diversity_mask_loss(z, temperature=0.1, batch_tile=None):
    """Pallas TPU implementation of DiversityMask.forward. Returns shape (batch,)."""
    B, M, D = z.shape
    assert M >= 2, "mask_num must be >= 2"
    K = M - 1
    scale = float(1.0 / np.abs(K * np.log(1.0 / K)))      # matches the PyTorch module

    tb = _pick_batch_tile(B, M, D, z.dtype.itemsize) if batch_tile is None else int(batch_tile)
    tb = max(1, min(tb, B))
    if tb < B and tb % 8 != 0:
        tb = max(8, (tb // 8) * 8)
    grid = int(pl.cdiv(B, tb))                            # ragged last block allowed (no jnp.pad)

    z2d = z.reshape(B, M * D)                             # contiguous reshape, no HBM copy

    kernel = functools.partial(_diversity_mask_kernel, M=M, D=D,
                               inv_temp=float(1.0 / temperature), scale=scale)

    out = pl.pallas_call(
        kernel,
        out_shape=jax.ShapeDtypeStruct((grid, tb), jnp.float32),
        grid=(grid,),
        in_specs=[pl.BlockSpec((tb, M * D), lambda b: (b, 0))],
        out_specs=pl.BlockSpec((1, tb), lambda b: (b, 0)),
        compiler_params=pltpu.CompilerParams(dimension_semantics=("parallel",)),
    )(z2d)
    # Flatten (grid, tb) -> (grid*tb,) (contiguous) and drop the ragged-tail lanes.
    return out.reshape(-1)[:B]


def _reference(z, temperature=0.1):
    """Pure-JAX reference mirroring the PyTorch code (for sanity checking).

    Uses an elementwise broadcast-sum instead of einsum so the reference itself is exact
    f32 (no TPU default-precision matmul) -- small shapes only.
    """
    z = z.astype(jnp.float32)
    nrm = jnp.sqrt(jnp.sum(z * z, axis=-1, keepdims=True))
    z_n = z / jnp.maximum(nrm, 1e-12)
    sim = jnp.sum(z_n[:, :, None, :] * z_n[:, None, :, :], axis=-1) / temperature
    e = jnp.exp(sim)
    M = z.shape[1]
    eye = jnp.eye(M, dtype=bool)[None]
    trans = jnp.sum(jnp.where(~eye, e, 0.0), axis=-1)
    K = M - 1
    scale = 1.0 / np.abs(K * np.log(1.0 / K))
    return jnp.sum(jnp.log(trans) * scale, axis=-1)


if __name__ == "__main__":
    key = jax.random.PRNGKey(0)

    # Small shape matching the module's natural sizes: (batch, mask_num, z_dim).
    batch, mask_num, z_dim = 2, 8, 32
    z_small = jax.random.normal(key, (batch, mask_num, z_dim), dtype=jnp.float32)
    loss = jax.block_until_ready(diversity_mask_loss(z_small, temperature=0.1))
    ref = jax.block_until_ready(_reference(z_small, temperature=0.1))
    np.testing.assert_allclose(np.asarray(loss), np.asarray(ref), rtol=1e-5, atol=1e-5)

    # Larger batch with an explicit tile: exercises the multi-step grid and the ragged
    # (partial) last block path -- 100 rows with tb=32 -> 4 grid steps, last one partial.
    key2 = jax.random.PRNGKey(1)
    z_large = jax.random.normal(key2, (100, mask_num, z_dim), dtype=jnp.float32)
    loss_l = jax.block_until_ready(diversity_mask_loss(z_large, temperature=0.1, batch_tile=32))
    ref_l = jax.block_until_ready(_reference(z_large, temperature=0.1))
    np.testing.assert_allclose(np.asarray(loss_l), np.asarray(ref_l), rtol=1e-5, atol=1e-5)

    # Auto-picked tile path on the larger batch as well.
    loss_a = jax.block_until_ready(diversity_mask_loss(z_large, temperature=0.1))
    np.testing.assert_allclose(np.asarray(loss_a), np.asarray(ref_l), rtol=1e-5, atol=1e-5)

    print("KERNEL_OK")
</pallas_src>

<mosaic_0001>
module attributes {stable_mosaic.version = 11 : i64} {
  func.func @_diversity_mask_kernel(%arg0: i32, %arg1: memref<2x256xf32, #tpu.memory_space<vmem>>, %arg2: memref<1x2xf32, #tpu.memory_space<vmem>>) attributes {dimension_semantics = [#tpu.dimension_semantics<parallel>], iteration_bounds = array<i64: 1>, scalar_prefetch = 0 : i64, scratch_operands = 0 : i64, tpu.core_type = #tpu.core_type<tc>, window_params = [{transform_indices = @transform_0, window_bounds = array<i64: 2, 256>}, {transform_indices = @transform_1, window_bounds = array<i64: 1, 2>}]} {
    %c0 = arith.constant 0 : index
    %c0_0 = arith.constant 0 : index
    %0 = vector.load %arg1[%c0, %c0_0] : memref<2x256xf32, #tpu.memory_space<vmem>>, vector<2x256xf32>
    %1 = tpu.transpose %0, [1, 0] : vector<2x256xf32> -> vector<256x2xf32>
    %2 = vector.extract_strided_slice %1 {offsets = [0, 0], sizes = [32, 2], strides = [1, 1]} : vector<256x2xf32> to vector<32x2xf32>
    %3 = arith.mulf %2, %2 : vector<32x2xf32>
    %cst = arith.constant dense<0.000000e+00> : vector<2xf32>
    %4 = vector.multi_reduction <add>, %3, %cst [0] : vector<32x2xf32> to vector<2xf32>
    %5 = vector.shape_cast %4 : vector<2xf32> to vector<1x2xf32>
    %cst_1 = arith.constant 1.000000e-24 : f32
    %6 = vector.broadcast %cst_1 : f32 to vector<1x2xf32>
    %7 = arith.maximumf %5, %6 : vector<1x2xf32>
    %8 = math.rsqrt %7 : vector<1x2xf32>
    %9 = vector.broadcast %8 : vector<1x2xf32> to vector<32x2xf32>
    %10 = arith.mulf %2, %9 : vector<32x2xf32>
    %11 = vector.extract_strided_slice %1 {offsets = [32, 0], sizes = [32, 2], strides = [1, 1]} : vector<256x2xf32> to vector<32x2xf32>
    %12 = arith.mulf %11, %11 : vector<32x2xf32>
    %cst_2 = arith.constant dense<0.000000e+00> : vector<2xf32>
    %13 = vector.multi_reduction <add>, %12, %cst_2 [0] : vector<32x2xf32> to vector<2xf32>
    %14 = vector.shape_cast %13 : vector<2xf32> to vector<1x2xf32>
    %cst_3 = arith.constant 1.000000e-24 : f32
    %15 = vector.broadcast %cst_3 : f32 to vector<1x2xf32>
    %16 = arith.maximumf %14, %15 : vector<1x2xf32>
    %17 = math.rsqrt %16 : vector<1x2xf32>
    %18 = vector.broadcast %17 : vector<1x2xf32> to vector<32x2xf32>
    %19 = arith.mulf %11, %18 : vector<32x2xf32>
    %20 = vector.extract_strided_slice %1 {offsets = [64, 0], sizes = [32, 2], strides = [1, 1]} : vector<256x2xf32> to vector<32x2xf32>
    %21 = arith.mulf %20, %20 : vector<32x2xf32>
    %cst_4 = arith.constant dense<0.000000e+00> : vector<2xf32>
    %22 = vector.multi_reduction <add>, %21, %cst_4 [0] : vector<32x2xf32> to vector<2xf32>
    %23 = vector.shape_cast %22 : vector<2xf32> to vector<1x2xf32>
    %cst_5 = arith.constant 1.000000e-24 : f32
    %24 = vector.broadcast %cst_5 : f32 to vector<1x2xf32>
    %25 = arith.maximumf %23, %24 : vector<1x2xf32>
    %26 = math.rsqrt %25 : vector<1x2xf32>
    %27 = vector.broadcast %26 : vector<1x2xf32> to vector<32x2xf32>
    %28 = arith.mulf %20, %27 : vector<32x2xf32>
    %29 = vector.extract_strided_slice %1 {offsets = [96, 0], sizes = [32, 2], strides = [1, 1]} : vector<256x2xf32> to vector<32x2xf32>
    %30 = arith.mulf %29, %29 : vector<32x2xf32>
    %cst_6 = arith.constant dense<0.000000e+00> : vector<2xf32>
    %31 = vector.multi_reduction <add>, %30, %cst_6 [0] : vector<32x2xf32> to vector<2xf32>
    %32 = vector.shape_cast %31 : vector<2xf32> to vector<1x2xf32>
    %cst_7 = arith.constant 1.000000e-24 : f32
    %33 = vector.broadcast %cst_7 : f32 to vector<1x2xf32>
    %34 = arith.maximumf %32, %33 : vector<1x2xf32>
    %35 = math.rsqrt %34 : vector<1x2xf32>
    %36 = vector.broadcast %35 : vector<1x2xf32> to vector<32x2xf32>
    %37 = arith.mulf %29, %36 : vector<32x2xf32>
    %38 = vector.extract_strided_slice %1 {offsets = [128, 0], sizes = [32, 2], strides = [1, 1]} : vector<256x2xf32> to vector<32x2xf32>
    %39 = arith.mulf %38, %38 : vector<32x2xf32>
    %cst_8 = arith.constant dense<0.000000e+00> : vector<2xf32>
    %40 = vector.multi_reduction <add>, %39, %cst_8 [0] : vector<32x2xf32> to vector<2xf32>
    %41 = vector.shape_cast %40 : vector<2xf32> to vector<1x2xf32>
    %cst_9 = arith.constant 1.000000e-24 : f32
    %42 = vector.broadcast %cst_9 : f32 to vector<1x2xf32>
    %43 = arith.maximumf %41, %42 : vector<1x2xf32>
    %44 = math.rsqrt %43 : vector<1x2xf32>
    %45 = vector.broadcast %44 : vector<1x2xf32> to vector<32x2xf32>
    %46 = arith.mulf %38, %45 : vector<32x2xf32>
    %47 = vector.extract_strided_slice %1 {offsets = [160, 0], sizes = [32, 2], strides = [1, 1]} : vector<256x2xf32> to vector<32x2xf32>
    %48 = arith.mulf %47, %47 : vector<32x2xf32>
    %cst_10 = arith.constant dense<0.000000e+00> : vector<2xf32>
    %49 = vector.multi_reduction <add>, %48, %cst_10 [0] : vector<32x2xf32> to vector<2xf32>
    %50 = vector.shape_cast %49 : vector<2xf32> to vector<1x2xf32>
    %cst_11 = arith.constant 1.000000e-24 : f32
    %51 = vector.broadcast %cst_11 : f32 to vector<1x2xf32>
    %52 = arith.maximumf %50, %51 : vector<1x2xf32>
    %53 = math.rsqrt %52 : vector<1x2xf32>
    %54 = vector.broadcast %53 : vector<1x2xf32> to vector<32x2xf32>
    %55 = arith.mulf %47, %54 : vector<32x2xf32>
    %56 = vector.extract_strided_slice %1 {offsets = [192, 0], sizes = [32, 2], strides = [1, 1]} : vector<256x2xf32> to vector<32x2xf32>
    %57 = arith.mulf %56, %56 : vector<32x2xf32>
    %cst_12 = arith.constant dense<0.000000e+00> : vector<2xf32>
    %58 = vector.multi_reduction <add>, %57, %cst_12 [0] : vector<32x2xf32> to vector<2xf32>
    %59 = vector.shape_cast %58 : vector<2xf32> to vector<1x2xf32>
    %cst_13 = arith.constant 1.000000e-24 : f32
    %60 = vector.broadcast %cst_13 : f32 to vector<1x2xf32>
    %61 = arith.maximumf %59, %60 : vector<1x2xf32>
    %62 = math.rsqrt %61 : vector<1x2xf32>
    %63 = vector.broadcast %62 : vector<1x2xf32> to vector<32x2xf32>
    %64 = arith.mulf %56, %63 : vector<32x2xf32>
    %65 = vector.extract_strided_slice %1 {offsets = [224, 0], sizes = [32, 2], strides = [1, 1]} : vector<256x2xf32> to vector<32x2xf32>
    %66 = arith.mulf %65, %65 : vector<32x2xf32>
    %cst_14 = arith.constant dense<0.000000e+00> : vector<2xf32>
    %67 = vector.multi_reduction <add>, %66, %cst_14 [0] : vector<32x2xf32> to vector<2xf32>
    %68 = vector.shape_cast %67 : vector<2xf32> to vector<1x2xf32>
    %cst_15 = arith.constant 1.000000e-24 : f32
    %69 = vector.broadcast %cst_15 : f32 to vector<1x2xf32>
    %70 = arith.maximumf %68, %69 : vector<1x2xf32>
    %71 = math.rsqrt %70 : vector<1x2xf32>
    %72 = vector.broadcast %71 : vector<1x2xf32> to vector<32x2xf32>
    %73 = arith.mulf %65, %72 : vector<32x2xf32>
    %74 = arith.mulf %10, %19 : vector<32x2xf32>
    %cst_16 = arith.constant dense<0.000000e+00> : vector<2xf32>
    %75 = vector.multi_reduction <add>, %74, %cst_16 [0] : vector<32x2xf32> to vector<2xf32>
    %76 = vector.shape_cast %75 : vector<2xf32> to vector<1x2xf32>
    %cst_17 = arith.constant 1.000000e+01 : f32
    %77 = vector.broadcast %cst_17 : f32 to vector<1x2xf32>
    %78 = arith.mulf %76, %77 : vector<1x2xf32>
    %79 = math.exp %78 : vector<1x2xf32>
    %80 = arith.mulf %10, %28 : vector<32x2xf32>
    %cst_18 = arith.constant dense<0.000000e+00> : vector<2xf32>
    %81 = vector.multi_reduction <add>, %80, %cst_18 [0] : vector<32x2xf32> to vector<2xf32>
    %82 = vector.shape_cast %81 : vector<2xf32> to vector<1x2xf32>
    %cst_19 = arith.constant 1.000000e+01 : f32
    %83 = vector.broadcast %cst_19 : f32 to vector<1x2xf32>
    %84 = arith.mulf %82, %83 : vector<1x2xf32>
    %85 = math.exp %84 : vector<1x2xf32>
    %86 = arith.mulf %10, %37 : vector<32x2xf32>
    %cst_20 = arith.constant dense<0.000000e+00> : vector<2xf32>
    %87 = vector.multi_reduction <add>, %86, %cst_20 [0] : vector<32x2xf32> to vector<2xf32>
    %88 = vector.shape_cast %87 : vector<2xf32> to vector<1x2xf32>
    %cst_21 = arith.constant 1.000000e+01 : f32
    %89 = vector.broadcast %cst_21 : f32 to vector<1x2xf32>
    %90 = arith.mulf %88, %89 : vector<1x2xf32>
    %91 = math.exp %90 : vector<1x2xf32>
    %92 = arith.mulf %10, %46 : vector<32x2xf32>
    %cst_22 = arith.constant dense<0.000000e+00> : vector<2xf32>
    %93 = vector.multi_reduction <add>, %92, %cst_22 [0] : vector<32x2xf32> to vector<2xf32>
    %94 = vector.shape_cast %93 : vector<2xf32> to vector<1x2xf32>
    %cst_23 = arith.constant 1.000000e+01 : f32
    %95 = vector.broadcast %cst_23 : f32 to vector<1x2xf32>
    %96 = arith.mulf %94, %95 : vector<1x2xf32>
    %97 = math.exp %96 : vector<1x2xf32>
    %98 = arith.mulf %10, %55 : vector<32x2xf32>
    %cst_24 = arith.constant dense<0.000000e+00> : vector<2xf32>
    %99 = vector.multi_reduction <add>, %98, %cst_24 [0] : vector<32x2xf32> to vector<2xf32>
    %100 = vector.shape_cast %99 : vector<2xf32> to vector<1x2xf32>
    %cst_25 = arith.constant 1.000000e+01 : f32
    %101 = vector.broadcast %cst_25 : f32 to vector<1x2xf32>
    %102 = arith.mulf %100, %101 : vector<1x2xf32>
    %103 = math.exp %102 : vector<1x2xf32>
    %104 = arith.mulf %10, %64 : vector<32x2xf32>
    %cst_26 = arith.constant dense<0.000000e+00> : vector<2xf32>
    %105 = vector.multi_reduction <add>, %104, %cst_26 [0] : vector<32x2xf32> to vector<2xf32>
    %106 = vector.shape_cast %105 : vector<2xf32> to vector<1x2xf32>
    %cst_27 = arith.constant 1.000000e+01 : f32
    %107 = vector.broadcast %cst_27 : f32 to vector<1x2xf32>
    %108 = arith.mulf %106, %107 : vector<1x2xf32>
    %109 = math.exp %108 : vector<1x2xf32>
    %110 = arith.mulf %10, %73 : vector<32x2xf32>
    %cst_28 = arith.constant dense<0.000000e+00> : vector<2xf32>
    %111 = vector.multi_reduction <add>, %110, %cst_28 [0] : vector<32x2xf32> to vector<2xf32>
    %112 = vector.shape_cast %111 : vector<2xf32> to vector<1x2xf32>
    %cst_29 = arith.constant 1.000000e+01 : f32
    %113 = vector.broadcast %cst_29 : f32 to vector<1x2xf32>
    %114 = arith.mulf %112, %113 : vector<1x2xf32>
    %115 = math.exp %114 : vector<1x2xf32>
    %116 = arith.mulf %19, %28 : vector<32x2xf32>
    %cst_30 = arith.constant dense<0.000000e+00> : vector<2xf32>
    %117 = vector.multi_reduction <add>, %116, %cst_30 [0] : vector<32x2xf32> to vector<2xf32>
    %118 = vector.shape_cast %117 : vector<2xf32> to vector<1x2xf32>
    %cst_31 = arith.constant 1.000000e+01 : f32
    %119 = vector.broadcast %cst_31 : f32 to vector<1x2xf32>
    %120 = arith.mulf %118, %119 : vector<1x2xf32>
    %121 = math.exp %120 : vector<1x2xf32>
    %122 = arith.mulf %19, %37 : vector<32x2xf32>
    %cst_32 = arith.constant dense<0.000000e+00> : vector<2xf32>
    %123 = vector.multi_reduction <add>, %122, %cst_32 [0] : vector<32x2xf32> to vector<2xf32>
    %124 = vector.shape_cast %123 : vector<2xf32> to vector<1x2xf32>
    %cst_33 = arith.constant 1.000000e+01 : f32
    %125 = vector.broadcast %cst_33 : f32 to vector<1x2xf32>
    %126 = arith.mulf %124, %125 : vector<1x2xf32>
    %127 = math.exp %126 : vector<1x2xf32>
    %128 = arith.mulf %19, %46 : vector<32x2xf32>
    %cst_34 = arith.constant dense<0.000000e+00> : vector<2xf32>
    %129 = vector.multi_reduction <add>, %128, %cst_34 [0] : vector<32x2xf32> to vector<2xf32>
    %130 = vector.shape_cast %129 : vector<2xf32> to vector<1x2xf32>
    %cst_35 = arith.constant 1.000000e+01 : f32
    %131 = vector.broadcast %cst_35 : f32 to vector<1x2xf32>
    %132 = arith.mulf %130, %131 : vector<1x2xf32>
    %133 = math.exp %132 : vector<1x2xf32>
    %134 = arith.mulf %19, %55 : vector<32x2xf32>
    %cst_36 = arith.constant dense<0.000000e+00> : vector<2xf32>
    %135 = vector.multi_reduction <add>, %134, %cst_36 [0] : vector<32x2xf32> to vector<2xf32>
    %136 = vector.shape_cast %135 : vector<2xf32> to vector<1x2xf32>
    %cst_37 = arith.constant 1.000000e+01 : f32
    %137 = vector.broadcast %cst_37 : f32 to vector<1x2xf32>
    %138 = arith.mulf %136, %137 : vector<1x2xf32>
    %139 = math.exp %138 : vector<1x2xf32>
    %140 = arith.mulf %19, %64 : vector<32x2xf32>
    %cst_38 = arith.constant dense<0.000000e+00> : vector<2xf32>
    %141 = vector.multi_reduction <add>, %140, %cst_38 [0] : vector<32x2xf32> to vector<2xf32>
    %142 = vector.shape_cast %141 : vector<2xf32> to vector<1x2xf32>
    %cst_39 = arith.constant 1.000000e+01 : f32
    %143 = vector.broadcast %cst_39 : f32 to vector<1x2xf32>
    %144 = arith.mulf %142, %143 : vector<1x2xf32>
    %145 = math.exp %144 : vector<1x2xf32>
    %146 = arith.mulf %19, %73 : vector<32x2xf32>
    %cst_40 = arith.constant dense<0.000000e+00> : vector<2xf32>
    %147 = vector.multi_reduction <add>, %146, %cst_40 [0] : vector<32x2xf32> to vector<2xf32>
    %148 = vector.shape_cast %147 : vector<2xf32> to vector<1x2xf32>
    %cst_41 = arith.constant 1.000000e+01 : f32
    %149 = vector.broadcast %cst_41 : f32 to vector<1x2xf32>
    %150 = arith.mulf %148, %149 : vector<1x2xf32>
    %151 = math.exp %150 : vector<1x2xf32>
    %152 = arith.mulf %28, %37 : vector<32x2xf32>
    %cst_42 = arith.constant dense<0.000000e+00> : vector<2xf32>
    %153 = vector.multi_reduction <add>, %152, %cst_42 [0] : vector<32x2xf32> to vector<2xf32>
    %154 = vector.shape_cast %153 : vector<2xf32> to vector<1x2xf32>
    %cst_43 = arith.constant 1.000000e+01 : f32
    %155 = vector.broadcast %cst_43 : f32 to vector<1x2xf32>
    %156 = arith.mulf %154, %155 : vector<1x2xf32>
    %157 = math.exp %156 : vector<1x2xf32>
    %158 = arith.mulf %28, %46 : vector<32x2xf32>
    %cst_44 = arith.constant dense<0.000000e+00> : vector<2xf32>
    %159 = vector.multi_reduction <add>, %158, %cst_44 [0] : vector<32x2xf32> to vector<2xf32>
    %160 = vector.shape_cast %159 : vector<2xf32> to vector<1x2xf32>
    %cst_45 = arith.constant 1.000000e+01 : f32
    %161 = vector.broadcast %cst_45 : f32 to vector<1x2xf32>
    %162 = arith.mulf %160, %161 : vector<1x2xf32>
    %163 = math.exp %162 : vector<1x2xf32>
    %164 = arith.mulf %28, %55 : vector<32x2xf32>
    %cst_46 = arith.constant dense<0.000000e+00> : vector<2xf32>
    %165 = vector.multi_reduction <add>, %164, %cst_46 [0] : vector<32x2xf32> to vector<2xf32>
    %166 = vector.shape_cast %165 : vector<2xf32> to vector<1x2xf32>
    %cst_47 = arith.constant 1.000000e+01 : f32
    %167 = vector.broadcast %cst_47 : f32 to vector<1x2xf32>
    %168 = arith.mulf %166, %167 : vector<1x2xf32>
    %169 = math.exp %168 : vector<1x2xf32>
    %170 = arith.mulf %28, %64 : vector<32x2xf32>
    %cst_48 = arith.constant dense<0.000000e+00> : vector<2xf32>
    %171 = vector.multi_reduction <add>, %170, %cst_48 [0] : vector<32x2xf32> to vector<2xf32>
    %172 = vector.shape_cast %171 : vector<2xf32> to vector<1x2xf32>
    %cst_49 = arith.constant 1.000000e+01 : f32
    %173 = vector.broadcast %cst_49 : f32 to vector<1x2xf32>
    %174 = arith.mulf %172, %173 : vector<1x2xf32>
    %175 = math.exp %174 : vector<1x2xf32>
    %176 = arith.mulf %28, %73 : vector<32x2xf32>
    %cst_50 = arith.constant dense<0.000000e+00> : vector<2xf32>
    %177 = vector.multi_reduction <add>, %176, %cst_50 [0] : vector<32x2xf32> to vector<2xf32>
    %178 = vector.shape_cast %177 : vector<2xf32> to vector<1x2xf32>
    %cst_51 = arith.constant 1.000000e+01 : f32
    %179 = vector.broadcast %cst_51 : f32 to vector<1x2xf32>
    %180 = arith.mulf %178, %179 : vector<1x2xf32>
    %181 = math.exp %180 : vector<1x2xf32>
    %182 = arith.mulf %37, %46 : vector<32x2xf32>
    %cst_52 = arith.constant dense<0.000000e+00> : vector<2xf32>
    %183 = vector.multi_reduction <add>, %182, %cst_52 [0] : vector<32x2xf32> to vector<2xf32>
    %184 = vector.shape_cast %183 : vector<2xf32> to vector<1x2xf32>
    %cst_53 = arith.constant 1.000000e+01 : f32
    %185 = vector.broadcast %cst_53 : f32 to vector<1x2xf32>
    %186 = arith.mulf %184, %185 : vector<1x2xf32>
    %187 = math.exp %186 : vector<1x2xf32>
    %188 = arith.mulf %37, %55 : vector<32x2xf32>
    %cst_54 = arith.constant dense<0.000000e+00> : vector<2xf32>
    %189 = vector.multi_reduction <add>, %188, %cst_54 [0] : vector<32x2xf32> to vector<2xf32>
    %190 = vector.shape_cast %189 : vector<2xf32> to vector<1x2xf32>
    %cst_55 = arith.constant 1.000000e+01 : f32
    %191 = vector.broadcast %cst_55 : f32 to vector<1x2xf32>
    %192 = arith.mulf %190, %191 : vector<1x2xf32>
    %193 = math.exp %192 : vector<1x2xf32>
    %194 = arith.mulf %37, %64 : vector<32x2xf32>
    %cst_56 = arith.constant dense<0.000000e+00> : vector<2xf32>
    %195 = vector.multi_reduction <add>, %194, %cst_56 [0] : vector<32x2xf32> to vector<2xf32>
    %196 = vector.shape_cast %195 : vector<2xf32> to vector<1x2xf32>
    %cst_57 = arith.constant 1.000000e+01 : f32
    %197 = vector.broadcast %cst_57 : f32 to vector<1x2xf32>
    %198 = arith.mulf %196, %197 : vector<1x2xf32>
    %199 = math.exp %198 : vector<1x2xf32>
    %200 = arith.mulf %37, %73 : vector<32x2xf32>
    %cst_58 = arith.constant dense<0.000000e+00> : vector<2xf32>
    %201 = vector.multi_reduction <add>, %200, %cst_58 [0] : vector<32x2xf32> to vector<2xf32>
    %202 = vector.shape_cast %201 : vector<2xf32> to vector<1x2xf32>
    %cst_59 = arith.constant 1.000000e+01 : f32
    %203 = vector.broadcast %cst_59 : f32 to vector<1x2xf32>
    %204 = arith.mulf %202, %203 : vector<1x2xf32>
    %205 = math.exp %204 : vector<1x2xf32>
    %206 = arith.mulf %46, %55 : vector<32x2xf32>
    %cst_60 = arith.constant dense<0.000000e+00> : vector<2xf32>
    %207 = vector.multi_reduction <add>, %206, %cst_60 [0] : vector<32x2xf32> to vector<2xf32>
    %208 = vector.shape_cast %207 : vector<2xf32> to vector<1x2xf32>
    %cst_61 = arith.constant 1.000000e+01 : f32
    %209 = vector.broadcast %cst_61 : f32 to vector<1x2xf32>
    %210 = arith.mulf %208, %209 : vector<1x2xf32>
    %211 = math.exp %210 : vector<1x2xf32>
    %212 = arith.mulf %46, %64 : vector<32x2xf32>
    %cst_62 = arith.constant dense<0.000000e+00> : vector<2xf32>
    %213 = vector.multi_reduction <add>, %212, %cst_62 [0] : vector<32x2xf32> to vector<2xf32>
    %214 = vector.shape_cast %213 : vector<2xf32> to vector<1x2xf32>
    %cst_63 = arith.constant 1.000000e+01 : f32
    %215 = vector.broadcast %cst_63 : f32 to vector<1x2xf32>
    %216 = arith.mulf %214, %215 : vector<1x2xf32>
    %217 = math.exp %216 : vector<1x2xf32>
    %218 = arith.mulf %46, %73 : vector<32x2xf32>
    %cst_64 = arith.constant dense<0.000000e+00> : vector<2xf32>
    %219 = vector.multi_reduction <add>, %218, %cst_64 [0] : vector<32x2xf32> to vector<2xf32>
    %220 = vector.shape_cast %219 : vector<2xf32> to vector<1x2xf32>
    %cst_65 = arith.constant 1.000000e+01 : f32
    %221 = vector.broadcast %cst_65 : f32 to vector<1x2xf32>
    %222 = arith.mulf %220, %221 : vector<1x2xf32>
    %223 = math.exp %222 : vector<1x2xf32>
    %224 = arith.mulf %55, %64 : vector<32x2xf32>
    %cst_66 = arith.constant dense<0.000000e+00> : vector<2xf32>
    %225 = vector.multi_reduction <add>, %224, %cst_66 [0] : vector<32x2xf32> to vector<2xf32>
    %226 = vector.shape_cast %225 : vector<2xf32> to vector<1x2xf32>
    %cst_67 = arith.constant 1.000000e+01 : f32
    %227 = vector.broadcast %cst_67 : f32 to vector<1x2xf32>
    %228 = arith.mulf %226, %227 : vector<1x2xf32>
    %229 = math.exp %228 : vector<1x2xf32>
    %230 = arith.mulf %55, %73 : vector<32x2xf32>
    %cst_68 = arith.constant dense<0.000000e+00> : vector<2xf32>
    %231 = vector.multi_reduction <add>, %230, %cst_68 [0] : vector<32x2xf32> to vector<2xf32>
    %232 = vector.shape_cast %231 : vector<2xf32> to vector<1x2xf32>
    %cst_69 = arith.constant 1.000000e+01 : f32
    %233 = vector.broadcast %cst_69 : f32 to vector<1x2xf32>
    %234 = arith.mulf %232, %233 : vector<1x2xf32>
    %235 = math.exp %234 : vector<1x2xf32>
    %236 = arith.mulf %64, %73 : vector<32x2xf32>
    %cst_70 = arith.constant dense<0.000000e+00> : vector<2xf32>
    %237 = vector.multi_reduction <add>, %236, %cst_70 [0] : vector<32x2xf32> to vector<2xf32>
    %238 = vector.shape_cast %237 : vector<2xf32> to vector<1x2xf32>
    %cst_71 = arith.constant 1.000000e+01 : f32
    %239 = vector.broadcast %cst_71 : f32 to vector<1x2xf32>
    %240 = arith.mulf %238, %239 : vector<1x2xf32>
    %241 = math.exp %240 : vector<1x2xf32>
    %242 = arith.addf %79, %85 : vector<1x2xf32>
    %243 = arith.addf %242, %91 : vector<1x2xf32>
    %244 = arith.addf %243, %97 : vector<1x2xf32>
    %245 = arith.addf %244, %103 : vector<1x2xf32>
    %246 = arith.addf %245, %109 : vector<1x2xf32>
    %247 = arith.addf %246, %115 : vector<1x2xf32>
    %248 = math.log %247 : vector<1x2xf32>
    %249 = arith.addf %79, %121 : vector<1x2xf32>
    %250 = arith.addf %249, %127 : vector<1x2xf32>
    %251 = arith.addf %250, %133 : vector<1x2xf32>
    %252 = arith.addf %251, %139 : vector<1x2xf32>
    %253 = arith.addf %252, %145 : vector<1x2xf32>
    %254 = arith.addf %253, %151 : vector<1x2xf32>
    %255 = math.log %254 : vector<1x2xf32>
    %256 = arith.addf %248, %255 : vector<1x2xf32>
    %257 = arith.addf %85, %121 : vector<1x2xf32>
    %258 = arith.addf %257, %157 : vector<1x2xf32>
    %259 = arith.addf %258, %163 : vector<1x2xf32>
    %260 = arith.addf %259, %169 : vector<1x2xf32>
    %261 = arith.addf %260, %175 : vector<1x2xf32>
    %262 = arith.addf %261, %181 : vector<1x2xf32>
    %263 = math.log %262 : vector<1x2xf32>
    %264 = arith.addf %256, %263 : vector<1x2xf32>
    %265 = arith.addf %91, %127 : vector<1x2xf32>
    %266 = arith.addf %265, %157 : vector<1x2xf32>
    %267 = arith.addf %266, %187 : vector<1x2xf32>
    %268 = arith.addf %267, %193 : vector<1x2xf32>
    %269 = arith.addf %268, %199 : vector<1x2xf32>
    %270 = arith.addf %269, %205 : vector<1x2xf32>
    %271 = math.log %270 : vector<1x2xf32>
    %272 = arith.addf %264, %271 : vector<1x2xf32>
    %273 = arith.addf %97, %133 : vector<1x2xf32>
    %274 = arith.addf %273, %163 : vector<1x2xf32>
    %275 = arith.addf %274, %187 : vector<1x2xf32>
    %276 = arith.addf %275, %211 : vector<1x2xf32>
    %277 = arith.addf %276, %217 : vector<1x2xf32>
    %278 = arith.addf %277, %223 : vector<1x2xf32>
    %279 = math.log %278 : vector<1x2xf32>
    %280 = arith.addf %272, %279 : vector<1x2xf32>
    %281 = arith.addf %103, %139 : vector<1x2xf32>
    %282 = arith.addf %281, %169 : vector<1x2xf32>
    %283 = arith.addf %282, %193 : vector<1x2xf32>
    %284 = arith.addf %283, %211 : vector<1x2xf32>
    %285 = arith.addf %284, %229 : vector<1x2xf32>
    %286 = arith.addf %285, %235 : vector<1x2xf32>
    %287 = math.log %286 : vector<1x2xf32>
    %288 = arith.addf %280, %287 : vector<1x2xf32>
    %289 = arith.addf %109, %145 : vector<1x2xf32>
    %290 = arith.addf %289, %175 : vector<1x2xf32>
    %291 = arith.addf %290, %199 : vector<1x2xf32>
    %292 = arith.addf %291, %217 : vector<1x2xf32>
    %293 = arith.addf %292, %229 : vector<1x2xf32>
    %294 = arith.addf %293, %241 : vector<1x2xf32>
    %295 = math.log %294 : vector<1x2xf32>
    %296 = arith.addf %288, %295 : vector<1x2xf32>
    %297 = arith.addf %115, %151 : vector<1x2xf32>
    %298 = arith.addf %297, %181 : vector<1x2xf32>
    %299 = arith.addf %298, %205 : vector<1x2xf32>
    %300 = arith.addf %299, %223 : vector<1x2xf32>
    %301 = arith.addf %300, %235 : vector<1x2xf32>
    %302 = arith.addf %301, %241 : vector<1x2xf32>
    %303 = math.log %302 : vector<1x2xf32>
    %304 = arith.addf %296, %303 : vector<1x2xf32>
    %cst_72 = arith.constant 0.07341405 : f32
    %305 = vector.broadcast %cst_72 : f32 to vector<1x2xf32>
    %306 = arith.mulf %304, %305 : vector<1x2xf32>
    %c0_73 = arith.constant 0 : index
    %c0_74 = arith.constant 0 : index
    %307 = vector.load %arg2[%c0_73, %c0_74] : memref<1x2xf32, #tpu.memory_space<vmem>>, vector<1x2xf32>
    tpu.vector_store %arg2[%c0_73, %c0_74], %306 {strides = array<i32>} : memref<1x2xf32, #tpu.memory_space<vmem>>, vector<1x2xf32>,
    return
  }
  func.func @transform_0(%arg0: i32) -> (i32, i32) {
    %c0_i32 = arith.constant 0 : i32
    %c0_i32_0 = arith.constant 0 : i32
    return %arg0, %c0_i32 : i32, i32
  }
  func.func @transform_1(%arg0: i32) -> (i32, i32) {
    %c0_i32 = arith.constant 0 : i32
    %c0_i32_0 = arith.constant 0 : i32
    return %arg0, %c0_i32 : i32, i32
  }
}

</mosaic_0001>

<bundles_post_ra>
// kernel: tpu_custom_call.1
= control target key start
LH: loop header
LB: loop body
LE: loop exit
PB: predicated region body
PF: predicated region fallthrough
CT: control target
= control target key end

     0   :  { %6 = vsyncpa [#allocation3], 0  ;;  %s1780_s0 = inlined_call_operand.hbm [shape: f32[2,256], index: 0, kind: input, shape index: {}]   ;;  %s1781_s1 = inlined_call_operand.hbm [shape: f32[1,2], index: 1, kind: output, shape index: {}]  }
   0x1   :  { %7 = vsyncpa [#allocation4], 0  ;;  %s1071_s6 = smov [#allocation2]   ;;  %s1023_s10 = scalar_lea.hbm %s1780_s0, 64 }
   0x2   :  { %s14_s7 = sshll.u32 %s1071_s6, 4  ;;  %p1024_p0 = scmp.ne.s32.totalorder %s1780_s0, %s1023_s10  ;;  %s15_s7 = int_to_ptr.vmem [resolvable:$true] %s14_s7 }
   0x3   :  { %p1027_p1 = scmp.lt.u32.totalorder %s1023_s10, %s1780_s0 }
   0x5   :  { %p1029_p2 = pnand %p1027_p1, %p1024_p0 }
   0x7   :  { %1032 = shalt.err (!%p1029_p2)
}
   0x8   :  { %s1033_s15 = scalar_lea.vmem %s15_s7, 64  ;;  %p1038_p4 = scmp.lt.s32.totalorder %s15_s7, %s15_s7 }
   0x9   :  { %p1034_p3 = scmp.ne.s32.totalorder %s15_s7, %s1033_s15  ;;  %p1039_p5 = scmp.lt.s32.totalorder %s1033_s15, %s1033_s15 }
   0xb   :  { %p1040_p6 = por %p1039_p5, %p1038_p4 }
   0xd   :  { %p1041_p7 = pnand %p1040_p6, %p1034_p3 }
   0xf   :  { %1044 = shalt.err (!%p1041_p7)
}
  0x10   :  { %17 = dma.hbm_to_vmem [thread:$0]  %s1780_s0, 64, %s15_s7, [#allocation3]  }
  0x11   :  { %1067 = dma.done.wait [#allocation3], 64  }
  0x12   :  { %1068 = vsyncadd [#allocation3], 4294967232  ;;  %v931_v0 = vld.sshfl [vmem:[#allocation2] sm:$0x33 pattern:$0x76325410] }
  0x13   :  { %33 = vxpose.xlu0.b32.start.end [1/1] (short) %v931_v0, 128  ;;  %v30_v1 = vcombine.high %v931_v0, %v931_v0  ;;  %vm101_vm0 = vcmask 15360   ;;  %s1072_s0 = smov [#allocation5]   ;;  %vm914_vm1 = vcmask 8192  }
  0x14   :  { %s922_s18 = sshll.u32 %s1072_s0, 4  ;;  %s923_s18 = int_to_ptr.vmem [resolvable:$true] %s922_s18 }
  0x15   :  { %s1045_s19 = scalar_lea.vmem %s923_s18, 16  ;;  %s1049_s20 = scalar_lea.vmem %s923_s18, 32 }
  0x16   :  { %p1046_p8 = scmp.ne.s32.totalorder %s923_s18, %s1045_s19  ;;  %p1050_p9 = scmp.lt.s32.totalorder %s923_s18, %s923_s18 }
  0x17   :  { %p1051_p10 = scmp.lt.s32.totalorder %s1049_s20, %s1045_s19 }
  0x19   :  { %p1052_p11 = por %p1051_p10, %p1050_p9 }
  0x1b   :  { %p1053_p12 = pnand %p1052_p11, %p1046_p8 }
  0x50   :  { %65 = vxpose.xlu0.b32.start.end [1/1] (short) %v30_v1, 128 }
  0x93   :  { %v49_v2 = vpop.trf.xlu0 }
  0x94   :  { %v97_v3 = vmul.f32 %v49_v2, %v49_v2 }
  0x96   :  { %v102_v6 = vsel %vm101_vm0, %v97_v3, 0.0 }
  0x97   :  { %v50_v4 = vpop.trf.xlu0 }
  0x98   :  { %v98_v5 = vmul.f32 %v50_v4, %v50_v4 }
  0x9a   :  { %v103_v7 = vsel %vm101_vm0, %v98_v5, 0.0 }
  0x9b   :  { %v104_v8 = vadd.f32 %v103_v7, %v102_v6  ;;  %v51_v9 = vpop.trf.xlu0 }
  0x9c   :  { %v99_v10 = vmul.f32 %v51_v9, %v51_v9 }
  0x9e   :  { %v105_v11 = vsel %vm101_vm0, %v99_v10, 0.0 }
  0x9f   :  { %v106_v12 = vadd.f32 %v105_v11, %v104_v8  ;;  %v52_v13 = vpop.trf.xlu0 }
  0xa0   :  { %v100_v14 = vmul.f32 %v52_v13, %v52_v13 }
  0xa2   :  { %v107_v15 = vsel %vm101_vm0, %v100_v14, 0.0 }
  0xa3   :  { %v108_v16 = vadd.f32 %v107_v15, %v106_v12  ;;  %v1099_v17 = vpop.trf.xlu0 }
  0xa4   :  { %v121_v19 = vmul.f32 %v1099_v17, %v1099_v17 }
  0xa5   :  { %v109_v18 = vrot.slane %v108_v16, 4 }
  0xa6   :  { %v125_v24 = vsel %vm101_vm0, %v121_v19, 0.0 }
  0xa7   :  { %v110_v20 = vadd.f32 %v109_v18, %v108_v16  ;;  %v54_v21 = vpop.trf.xlu0 }
  0xa8   :  { %v122_v22 = vmul.f32 %v54_v21, %v54_v21 }
  0xa9   :  { %v111_v23 = vrot.slane %v110_v20, 2 }
  0xaa   :  { %v126_v25 = vsel %vm101_vm0, %v122_v22, 0.0 }
  0xab   :  { %v112_v26 = vadd.f32 %v111_v23, %v110_v20  ;;  %v127_v27 = vadd.f32 %v126_v25, %v125_v24  ;;  %v55_v28 = vpop.trf.xlu0 }
  0xac   :  { %v123_v29 = vmul.f32 %v55_v28, %v55_v28 }
  0xad   :  { %v113_v30 = vrot.slane %v112_v26, 1 }
  0xae   :  { %v128_v31 = vsel %vm101_vm0, %v123_v29, 0.0 }
  0xaf   :  { %v114_v32 = vadd.f32 %v113_v30, %v112_v26  ;;  %v129_v33 = vadd.f32 %v128_v31, %v127_v27  ;;  %v56_v34 = vpop.trf.xlu0 }
  0xb0   :  { %v124_v35 = vmul.f32 %v56_v34, %v56_v34 }
  0xb1   :  { %v115_v36 = vmax.f32 %v114_v32, 1e-24 }
  0xb2   :  { %v130_v37 = vsel %vm101_vm0, %v124_v35, 0.0 }
  0xb3   :  { %935 = vrsqrt.f32 %v115_v36  ;;  %v131_v38 = vadd.f32 %v130_v37, %v129_v33  ;;  %v1107_v39 = vpop.trf.xlu0 }
  0xb4   :  { %v144_v41 = vmul.f32 %v1107_v39, %v1107_v39 }
  0xb5   :  { %v132_v40 = vrot.slane %v131_v38, 4 }
  0xb6   :  { %v148_v46 = vsel %vm101_vm0, %v144_v41, 0.0 }
  0xb7   :  { %v133_v42 = vadd.f32 %v132_v40, %v131_v38  ;;  %v1111_v43 = vpop.trf.xlu0 }
  0xb8   :  { %v145_v44 = vmul.f32 %v1111_v43, %v1111_v43 }
  0xb9   :  { %v134_v45 = vrot.slane %v133_v42, 2 }
  0xba   :  { %v149_v47 = vsel %vm101_vm0, %v145_v44, 0.0 }
  0xbb   :  { %v135_v48 = vadd.f32 %v134_v45, %v133_v42  ;;  %v150_v49 = vadd.f32 %v149_v47, %v148_v46  ;;  %v1117_v50 = vpop.trf.xlu0 }
  0xbc   :  { %v146_v51 = vmul.f32 %v1117_v50, %v1117_v50 }
  0xbd   :  { %v936_v52 = vpop.eup %935  ;;  %v136_v53 = vrot.slane %v135_v48, 1 }
  0xbe   :  { %v1121_v54 = vmul.f32 %v936_v52, %v49_v2  ;;  %v1123_v55 = vmul.f32 %v936_v52, %v50_v4  ;;  %v1125_v56 = vmul.f32 %v936_v52, %v51_v9  ;;  %v1127_v57 = vmul.f32 %v936_v52, %v52_v13 }
  0xbf   :  { %v137_v58 = vadd.f32 %v136_v53, %v135_v48  ;;  %v151_v59 = vsel %vm101_vm0, %v146_v51, 0.0  ;;  %v60_v60 = vpop.trf.xlu0 }
  0xc0   :  { %v152_v61 = vadd.f32 %v151_v59, %v150_v49  ;;  %v147_v62 = vmul.f32 %v60_v60, %v60_v60 }
  0xc1   :  { %v138_v63 = vmax.f32 %v137_v58, 1e-24 }
  0xc2   :  { %v153_v0 = vsel %vm101_vm0, %v147_v62, 0.0 }
  0xc3   :  { %937 = vrsqrt.f32 %v138_v63  ;;  %v154_v1 = vadd.f32 %v153_v0, %v152_v61  ;;  %v1131_v3 = vpop.trf.xlu0 }
  0xc4   :  { %v167_v8 = vmul.f32 %v1131_v3, %v1131_v3 }
  0xc5   :  { %v155_v2 = vrot.slane %v154_v1, 4 }
  0xc6   :  { %v171_v15 = vsel %vm101_vm0, %v167_v8, 0.0 }
  0xc7   :  { %v156_v4 = vadd.f32 %v155_v2, %v154_v1  ;;  %v1133_v5 = vpop.trf.xlu0 }
  0xc8   :  { %v168_v6 = vmul.f32 %v1133_v5, %v1133_v5 }
  0xc9   :  { %v157_v7 = vrot.slane %v156_v4, 2 }
  0xca   :  { %v172_v11 = vsel %vm101_vm0, %v168_v6, 0.0 }
  0xcb   :  { %v158_v9 = vadd.f32 %v157_v7, %v156_v4  ;;  %v1139_v10 = vpop.trf.xlu0  ;;  %v173_v23 = vadd.f32 %v172_v11, %v171_v15 }
  0xcc   :  { %v169_v12 = vmul.f32 %v1139_v10, %v1139_v10 }
  0xcd   :  { %v938_v13 = vpop.eup %937  ;;  %v159_v14 = vrot.slane %v158_v9, 1 }
  0xce   :  { %v1146_v16 = vmul.f32 %v938_v13, %v1099_v17  ;;  %v1148_v18 = vmul.f32 %v938_v13, %v54_v21  ;;  %v1150_v19 = vmul.f32 %v938_v13, %v55_v28  ;;  %v1152_v20 = vmul.f32 %v938_v13, %v56_v34 }
  0xcf   :  { %v160_v22 = vadd.f32 %v159_v14, %v158_v9  ;;  %v174_v24 = vsel %vm101_vm0, %v169_v12, 0.0  ;;  %v1155_v25 = vpop.trf.xlu0 }
  0xd0   :  { %v282_v26 = vmul.f32 %v1146_v16, %v1121_v54  ;;  %v283_v27 = vmul.f32 %v1148_v18, %v1123_v55  ;;  %v284_v17 = vmul.f32 %v1150_v19, %v1125_v56  ;;  %v285_v21 = vmul.f32 %v1152_v20, %v1127_v57 }
  0xd1   :  { %v161_v28 = vmax.f32 %v160_v22, 1e-24  ;;  %v170_v29 = vmul.f32 %v1155_v25, %v1155_v25  ;;  %v175_v32 = vadd.f32 %v174_v24, %v173_v23 }
  0xd2   :  { %v286_v30 = vsel %vm101_vm0, %v282_v26, 0.0  ;;  %v287_v31 = vsel %vm101_vm0, %v283_v27, 0.0  ;;  %v289_v36 = vsel %vm101_vm0, %v284_v17, 0.0  ;;  %v291_v40 = vsel %vm101_vm0, %v285_v21, 0.0 }
  0xd3   :  { %v288_v33 = vadd.f32 %v287_v31, %v286_v30  ;;  %939 = vrsqrt.f32 %v161_v28  ;;  %v176_v34 = vsel %vm101_vm0, %v170_v29, 0.0  ;;  %v1170_v35 = vpop.trf.xlu0 }
  0xd4   :  { %v177_v37 = vadd.f32 %v176_v34, %v175_v32  ;;  %v190_v2 = vmul.f32 %v1170_v35, %v1170_v35 }
  0xd5   :  { %v290_v38 = vadd.f32 %v289_v36, %v288_v33 }
  0xd6   :  { %v178_v41 = vrot.slane %v177_v37, 4  ;;  %v194_v24 = vsel %vm101_vm0, %v190_v2, 0.0 }
  0xd7   :  { %v292_v42 = vadd.f32 %v291_v40, %v290_v38  ;;  %v1174_v44 = vpop.trf.xlu0 }
  0xd8   :  { %v179_v45 = vadd.f32 %v178_v41, %v177_v37  ;;  %v191_v58 = vmul.f32 %v1174_v44, %v1174_v44 }
  0xd9   :  { %v293_v46 = vrot.slane %v292_v42, 4 }
  0xda   :  { %v180_v47 = vrot.slane %v179_v45, 2  ;;  %v195_v14 = vsel %vm101_vm0, %v191_v58, 0.0 }
  0xdb   :  { %v294_v48 = vadd.f32 %v293_v46, %v292_v42  ;;  %v1176_v49 = vpop.trf.xlu0  ;;  %v196_v32 = vadd.f32 %v195_v14, %v194_v24 }
  0xdc   :  { %v181_v51 = vadd.f32 %v180_v47, %v179_v45  ;;  %v192_v4 = vmul.f32 %v1176_v49, %v1176_v49 }
  0xdd   :  { %v940_v52 = vpop.eup %939  ;;  %v295_v53 = vrot.slane %v294_v48, 2 }
  0xde   :  { %v1181_v59 = vmul.f32 %v940_v52, %v1107_v39  ;;  %v1184_v61 = vmul.f32 %v940_v52, %v1111_v43  ;;  %v1187_v62 = vmul.f32 %v940_v52, %v1117_v50  ;;  %v1189_v63 = vmul.f32 %v940_v52, %v60_v60 }
  0xdf   :  { %v296_v0 = vadd.f32 %v295_v53, %v294_v48  ;;  %v182_v1 = vrot.slane %v181_v51, 1  ;;  %v1195_v6 = vpop.trf.xlu0  ;;  %v197_v28 = vsel %vm101_vm0, %v192_v4, 0.0 }
  0xe0   :  { %v302_v39 = vmul.f32 %v1181_v59, %v1121_v54  ;;  %v303_v43 = vmul.f32 %v1184_v61, %v1123_v55  ;;  %v304_v50 = vmul.f32 %v1187_v62, %v1125_v56  ;;  %v305_v60 = vmul.f32 %v1189_v63, %v1127_v57 }
  0xe1   :  { %v422_v7 = vmul.f32 %v1181_v59, %v1146_v16  ;;  %v423_v8 = vmul.f32 %v1184_v61, %v1148_v18  ;;  %v424_v9 = vmul.f32 %v1187_v62, %v1150_v19  ;;  %v297_v11 = vrot.slane %v296_v0, 1 }
  0xe2   :  { %v306_v12 = vsel %vm101_vm0, %v302_v39, 0.0  ;;  %v307_v13 = vsel %vm101_vm0, %v303_v43, 0.0  ;;  %v425_v22 = vmul.f32 %v1189_v63, %v1152_v20  ;;  %v309_v27 = vsel %vm101_vm0, %v304_v50, 0.0 }
  0xe3   :  { %v308_v15 = vadd.f32 %v307_v13, %v306_v12  ;;  %v426_v23 = vsel %vm101_vm0, %v422_v7, 0.0  ;;  %v1218_v26 = vpop.trf.xlu0  ;;  %v427_v17 = vsel %vm101_vm0, %v423_v8, 0.0  ;;  %v183_v21 = vadd.f32 %v182_v1, %v181_v51 }
  0xe4   :  { %v311_v30 = vsel %vm101_vm0, %v305_v60, 0.0  ;;  %v428_v31 = vadd.f32 %v427_v17, %v426_v23  ;;  %v298_v33 = vadd.f32 %v297_v11, %v296_v0  ;;  %v429_v34 = vsel %vm101_vm0, %v424_v9, 0.0 }
  0xe5   :  { %v310_v29 = vadd.f32 %v309_v27, %v308_v15  ;;  %v184_v36 = vmax.f32 %v183_v21, 1e-24  ;;  %v193_v37 = vmul.f32 %v1195_v6, %v1195_v6  ;;  %v198_v41 = vadd.f32 %v197_v28, %v196_v32 }
  0xe6   :  { %v430_v40 = vadd.f32 %v429_v34, %v428_v31  ;;  %v431_v45 = vsel %vm101_vm0, %v425_v22, 0.0  ;;  %v299_v53 = vmul.f32 10.0, %v298_v33  ;;  %v213_v58 = vmul.f32 %v1218_v26, %v1218_v26 }
  0xe7   :  { %v312_v38 = vadd.f32 %v311_v30, %v310_v29  ;;  %v1227_v42 = vpop.trf.xlu0  ;;  %941 = vrsqrt.f32 %v184_v36  ;;  %v199_v46 = vsel %vm101_vm0, %v193_v37, 0.0 }
  0xe8   :  { %v432_v48 = vadd.f32 %v431_v45, %v430_v40  ;;  %v200_v51 = vadd.f32 %v199_v46, %v198_v41  ;;  %v214_v52 = vmul.f32 %v1227_v42, %v1227_v42  ;;  %v300_v8 = vmul.f32 1.442695, %v299_v53 }
  0xe9   :  { %v313_v47 = vrot.slane %v312_v38, 4  ;;  %v217_v9 = vsel %vm101_vm0, %v213_v58, 0.0 }
  0xea   :  { %v433_v1 = vrot.slane %v432_v48, 4  ;;  %v201_v2 = vrot.slane %v200_v51, 4  ;;  %v218_v7 = vsel %vm101_vm0, %v214_v52, 0.0  ;;  %943 = vpow2.f32 %v300_v8 }
  0xeb   :  { %v314_v0 = vadd.f32 %v313_v47, %v312_v38  ;;  %v1235_v4 = vpop.trf.xlu0  ;;  %v219_v22 = vadd.f32 %v218_v7, %v217_v9 }
  0xec   :  { %v215_v39 = vmul.f32 %v1235_v4, %v1235_v4  ;;  %v434_v50 = vadd.f32 %v433_v1, %v432_v48  ;;  %v202_v60 = vadd.f32 %v201_v2, %v200_v51 }
  0xed   :  { %v315_v43 = vrot.slane %v314_v0, 2 }
  0xee   :  { %v435_v12 = vrot.slane %v434_v50, 2  ;;  %v203_v13 = vrot.slane %v202_v60, 2  ;;  %v220_v14 = vsel %vm101_vm0, %v215_v39, 0.0 }
  0xef   :  { %v316_v11 = vadd.f32 %v315_v43, %v314_v0  ;;  %v1242_v15 = vpop.trf.xlu0  ;;  %v221_v28 = vadd.f32 %v220_v14, %v219_v22 }
  0xf0   :  { %v216_v23 = vmul.f32 %v1242_v15, %v1242_v15  ;;  %v436_v27 = vadd.f32 %v435_v12, %v434_v50  ;;  %v204_v17 = vadd.f32 %v203_v13, %v202_v60 }
  0xf1   :  { %v317_v24 = vrot.slane %v316_v11, 1  ;;  %v942_v21 = vpop.eup %941 }
  0xf2   :  { %v222_v29 = vsel %vm101_vm0, %v216_v23, 0.0  ;;  %v437_v31 = vrot.slane %v436_v27, 1  ;;  %v1248_v32 = vmul.f32 %v942_v21, %v1131_v3  ;;  %v1251_v33 = vmul.f32 %v942_v21, %v1133_v5 }
  0xf3   :  { %v318_v30 = vadd.f32 %v317_v24, %v316_v11  ;;  %v1253_v34 = vpop.trf.xlu0  ;;  %v1256_v36 = vmul.f32 %v942_v21, %v1139_v10  ;;  %v1259_v37 = vmul.f32 %v942_v21, %v1155_v25  ;;  %v205_v38 = vrot.slane %v204_v17, 1 }
  0xf4   :  { %v223_v40 = vadd.f32 %v222_v29, %v221_v28  ;;  %v438_v45 = vadd.f32 %v437_v31, %v436_v27  ;;  %v322_v46 = vmul.f32 %v1248_v32, %v1121_v54  ;;  %v323_v3 = vmul.f32 %v1251_v33, %v1123_v55  ;;  %v944_v23 = vpop.eup %943 }
  0xf5   :  { %v319_v41 = vmul.f32 10.0, %v318_v30  ;;  %v324_v5 = vmul.f32 %v1256_v36, %v1125_v56  ;;  %v325_v10 = vmul.f32 %v1259_v37, %v1127_v57  ;;  %v442_v25 = vmul.f32 %v1248_v32, %v1146_v16 }
  0xf6   :  { %v443_v47 = vmul.f32 %v1251_v33, %v1148_v18  ;;  %v439_v51 = vmul.f32 10.0, %v438_v45  ;;  %v326_v52 = vsel %vm101_vm0, %v322_v46, 0.0  ;;  %v327_v53 = vsel %vm101_vm0, %v323_v3, 0.0 }
  0xf7   :  { %v320_v48 = vmul.f32 1.442695, %v319_v41  ;;  %v1275_v58 = vpop.trf.xlu0  ;;  %v328_v0 = vadd.f32 %v327_v53, %v326_v52  ;;  %v329_v1 = vsel %vm101_vm0, %v324_v5, 0.0  ;;  %v331_v2 = vsel %vm101_vm0, %v325_v10, 0.0 }
  0xf8   :  { %v444_v39 = vmul.f32 %v1256_v36, %v1150_v19  ;;  %v440_v43 = vmul.f32 1.442695, %v439_v51  ;;  %v445_v50 = vmul.f32 %v1259_v37, %v1152_v20  ;;  %v446_v60 = vsel %vm101_vm0, %v442_v25, 0.0 }
  0xf9   :  { %945 = vpow2.f32 %v320_v48  ;;  %v330_v7 = vadd.f32 %v329_v1, %v328_v0  ;;  %v447_v8 = vsel %vm101_vm0, %v443_v47, 0.0  ;;  %v542_v11 = vmul.f32 %v1248_v32, %v1181_v59 }
  0xfa   :  { %v449_v9 = vsel %vm101_vm0, %v444_v39, 0.0  ;;  %947 = vpow2.f32 %v440_v43  ;;  %v448_v12 = vadd.f32 %v447_v8, %v446_v60  ;;  %v451_v13 = vsel %vm101_vm0, %v445_v50, 0.0 }
  0xfb   :  { %v543_v14 = vmul.f32 %v1251_v33, %v1184_v61  ;;  %v1291_v22 = vpop.trf.xlu0  ;;  %v332_v24 = vadd.f32 %v331_v2, %v330_v7  ;;  %v544_v27 = vmul.f32 %v1256_v36, %v1187_v62  ;;  %v545_v21 = vmul.f32 %v1259_v37, %v1189_v63 }
  0xfc   :  { %v546_v28 = vsel %vm101_vm0, %v542_v11, 0.0  ;;  %v450_v29 = vadd.f32 %v449_v9, %v448_v12  ;;  %v206_v31 = vadd.f32 %v205_v38, %v204_v17  ;;  %v224_v41 = vrot.slane %v223_v40, 4 }
  0xfd   :  { %v547_v30 = vsel %vm101_vm0, %v543_v14, 0.0  ;;  %v333_v45 = vrot.slane %v332_v24, 4  ;;  %v549_v3 = vsel %vm101_vm0, %v544_v27, 0.0  ;;  %v551_v5 = vsel %vm101_vm0, %v545_v21, 0.0 }
  0xfe   :  { %v548_v46 = vadd.f32 %v547_v30, %v546_v28  ;;  %v452_v10 = vadd.f32 %v451_v13, %v450_v29  ;;  %v207_v25 = vmax.f32 %v206_v31, 1e-24  ;;  %v225_v47 = vadd.f32 %v224_v41, %v223_v40 }
  0xff   :  { %v236_v48 = vmul.f32 %v1253_v34, %v1253_v34  ;;  %v1303_v51 = vpop.trf.xlu0  ;;  %v334_v52 = vadd.f32 %v333_v45, %v332_v24  ;;  %v237_v17 = vmul.f32 %v1275_v58, %v1275_v58  ;;  %v238_v38 = vmul.f32 %v1291_v22, %v1291_v22 }
 0x100   :  { %v550_v53 = vadd.f32 %v549_v3, %v548_v46  ;;  %v453_v0 = vrot.slane %v452_v10, 4  ;;  %949 = vrsqrt.f32 %v207_v25  ;;  %v226_v1 = vrot.slane %v225_v47, 2 }
 0x101   :  { %v240_v2 = vsel %vm101_vm0, %v236_v48, 0.0  ;;  %v335_v39 = vrot.slane %v334_v52, 2  ;;  %v241_v43 = vsel %vm101_vm0, %v237_v17, 0.0  ;;  %v243_v50 = vsel %vm101_vm0, %v238_v38, 0.0 }
 0x102   :  { %v552_v40 = vadd.f32 %v551_v5, %v550_v53  ;;  %v454_v7 = vadd.f32 %v453_v0, %v452_v10  ;;  %v227_v8 = vadd.f32 %v226_v1, %v225_v47  ;;  %v242_v9 = vadd.f32 %v241_v43, %v240_v2 }
 0x103   :  { %v946_v60 = vpop.eup %945  ;;  %v239_v11 = vmul.f32 %v1303_v51, %v1303_v51  ;;  %v1314_v12 = vpop.trf.xlu0  ;;  %v336_v13 = vadd.f32 %v335_v39, %v334_v52 }
 0x104   :  { %1790 = vst [vmem:[#allocation8_spill] sm:$0xff] %v1314_v12  ;;  %v553_v14 = vrot.slane %v552_v40, 4  ;;  %v1316_v24 = vadd.f32 %v946_v60, %v944_v23  ;;  %v948_v27 = vpop.eup %947  ;;  %v455_v21 = vrot.slane %v454_v7, 2  ;;  %v228_v28 = vrot.slane %v227_v8, 1 }
 0x105   :  { %v244_v29 = vadd.f32 %v243_v50, %v242_v9  ;;  %v245_v30 = vsel %vm101_vm0, %v239_v11, 0.0  ;;  %v337_v31 = vrot.slane %v336_v13, 1  ;;  %v259_v45 = vmul.f32 %v1314_v12, %v1314_v12 }
 0x106   :  { %v554_v41 = vadd.f32 %v553_v14, %v552_v40  ;;  %v1321_v46 = vadd.f32 %v948_v27, %v944_v23  ;;  %v456_v3 = vadd.f32 %v455_v21, %v454_v7  ;;  %v229_v5 = vadd.f32 %v228_v28, %v227_v8 }
 0x107   :  { %v246_v10 = vadd.f32 %v245_v30, %v244_v29  ;;  %v1323_v25 = vpop.trf.xlu0  ;;  %v1325_v47 = vadd.f32 %v948_v27, %v946_v60  ;;  %v338_v48 = vadd.f32 %v337_v31, %v336_v13  ;;  %v263_v43 = vsel %vm101_vm0, %v259_v45, 0.0 }
 0x108   :  { %1791 = vst [vmem:[#allocation9_spill] sm:$0xff] %v1323_v25  ;;  %v555_v52 = vrot.slane %v554_v41, 2  ;;  %v260_v53 = vmul.f32 %v1323_v25, %v1323_v25  ;;  %v457_v17 = vrot.slane %v456_v3, 1  ;;  %v230_v38 = vmax.f32 %v229_v5, 1e-24 }
 0x109   :  { %v247_v0 = vrot.slane %v246_v10, 4  ;;  %v339_v1 = vmul.f32 10.0, %v338_v48 }
 0x10a   :  { %v556_v2 = vadd.f32 %v555_v52, %v554_v41  ;;  %v950_v39 = vpop.eup %949  ;;  %v458_v23 = vadd.f32 %v457_v17, %v456_v3  ;;  %v264_v50 = vsel %vm101_vm0, %v260_v53, 0.0  ;;  %951 = vrsqrt.f32 %v230_v38 }
 0x10b   :  { %v1329_v40 = vadd.f32 %v247_v0, %v246_v10  ;;  %v1334_v7 = vmul.f32 %v950_v39, %v1170_v35  ;;  %v1337_v8 = vmul.f32 %v950_v39, %v1174_v44  ;;  %v340_v9 = vmul.f32 1.442695, %v339_v1 }
 0x10c   :  { %v557_v60 = vrot.slane %v556_v2, 1  ;;  %v459_v11 = vmul.f32 10.0, %v458_v23  ;;  %v1340_v13 = vmul.f32 %v950_v39, %v1176_v49  ;;  %v1343_v14 = vmul.f32 %v950_v39, %v1195_v6 }
 0x10d   :  { %v342_v21 = vmul.f32 %v1334_v7, %v1121_v54  ;;  %v343_v35 = vmul.f32 %v1337_v8, %v1123_v55  ;;  %v1349_v28 = vadd.f32 %v264_v50, %v263_v43  ;;  %v462_v49 = vmul.f32 %v1334_v7, %v1146_v16 }
 0x10e   :  { %v558_v27 = vadd.f32 %v557_v60, %v556_v2  ;;  %v344_v44 = vmul.f32 %v1340_v13, %v1125_v56  ;;  %v345_v29 = vmul.f32 %v1343_v14, %v1127_v57  ;;  %v463_v45 = vmul.f32 %v1337_v8, %v1148_v18 }
 0x10f   :  { %v346_v31 = vsel %vm101_vm0, %v342_v21, 0.0  ;;  %v347_v41 = vsel %vm101_vm0, %v343_v35, 0.0  ;;  %953 = vpow2.f32 %v340_v9  ;;  %v1362_v3 = vmul.f32 1.442695, %v459_v11 }
 0x110   :  { %v559_v30 = vmul.f32 10.0, %v558_v27  ;;  %v348_v5 = vadd.f32 %v347_v41, %v346_v31  ;;  %v349_v10 = vsel %vm101_vm0, %v344_v44, 0.0  ;;  %v351_v48 = vsel %vm101_vm0, %v345_v29, 0.0 }
 0x111   :  { %v464_v52 = vmul.f32 %v1340_v13, %v1150_v19  ;;  %v465_v53 = vmul.f32 %v1343_v14, %v1152_v20  ;;  %v466_v17 = vsel %vm101_vm0, %v462_v49, 0.0  ;;  %v467_v0 = vsel %vm101_vm0, %v463_v45, 0.0 }
 0x112   :  { %v350_v38 = vadd.f32 %v349_v10, %v348_v5  ;;  %v562_v1 = vmul.f32 %v1334_v7, %v1181_v59  ;;  %v563_v2 = vmul.f32 %v1337_v8, %v1184_v61  ;;  %v1376_v39 = vmul.f32 1.442695, %v559_v30 }
 0x113   :  { %v468_v23 = vadd.f32 %v467_v0, %v466_v17  ;;  %v469_v43 = vsel %vm101_vm0, %v464_v52, 0.0  ;;  %v471_v50 = vsel %vm101_vm0, %v465_v53, 0.0  ;;  %v564_v9 = vmul.f32 %v1340_v13, %v1187_v62 }
 0x114   :  { %v352_v60 = vadd.f32 %v351_v48, %v350_v38  ;;  %v565_v11 = vmul.f32 %v1343_v14, %v1189_v63  ;;  %v566_v27 = vsel %vm101_vm0, %v562_v1, 0.0  ;;  %v952_v21 = vpop.eup %951  ;;  %v567_v44 = vsel %vm101_vm0, %v563_v2, 0.0 }
 0x115   :  { %v470_v35 = vadd.f32 %v469_v43, %v468_v23  ;;  %v642_v29 = vmul.f32 %v1334_v7, %v1248_v32  ;;  %v643_v49 = vmul.f32 %v1337_v8, %v1251_v33  ;;  %v568_v31 = vadd.f32 %v567_v44, %v566_v27 }
 0x116   :  { %v353_v30 = vrot.slane %v352_v60, 4  ;;  %v569_v41 = vsel %vm101_vm0, %v564_v9, 0.0  ;;  %v571_v45 = vsel %vm101_vm0, %v565_v11, 0.0  ;;  %v644_v10 = vmul.f32 %v1340_v13, %v1256_v36 }
 0x117   :  { %v472_v5 = vadd.f32 %v471_v50, %v470_v35  ;;  %v645_v48 = vmul.f32 %v1343_v14, %v1259_v37  ;;  %v646_v52 = vsel %vm101_vm0, %v642_v29, 0.0  ;;  %v570_v17 = vadd.f32 %v569_v41, %v568_v31 }
 0x118   :  { %v354_v53 = vadd.f32 %v353_v30, %v352_v60  ;;  %v647_v38 = vsel %vm101_vm0, %v643_v49, 0.0  ;;  %v1399_v0 = vmul.f32 %v952_v21, %v1218_v26  ;;  %v649_v23 = vsel %vm101_vm0, %v644_v10, 0.0 }
 0x119   :  { %v473_v1 = vrot.slane %v472_v5, 4  ;;  %v648_v2 = vadd.f32 %v647_v38, %v646_v52  ;;  %v651_v43 = vsel %vm101_vm0, %v645_v48, 0.0  ;;  %v1403_v50 = vpop.eup %953  ;;  %v572_v11 = vadd.f32 %v571_v45, %v570_v17 }
 0x11a   :  { %v355_v9 = vrot.slane %v354_v53, 2  ;;  %v1406_v27 = vmul.f32 %v952_v21, %v1227_v42  ;;  %v1409_v60 = vmul.f32 %v952_v21, %v1235_v4  ;;  %v1412_v26 = vmul.f32 %v952_v21, %v1242_v15 }
 0x11b   :  { %v474_v35 = vadd.f32 %v473_v1, %v472_v5  ;;  %v650_v44 = vadd.f32 %v649_v23, %v648_v2  ;;  %v362_v29 = vmul.f32 %v1399_v0, %v1121_v54  ;;  %v573_v30 = vrot.slane %v572_v11, 4 }
 0x11c   :  { %1792 = vst [vmem:[#allocation10_spill] sm:$0xff] %v1412_v26  ;;  %v356_v49 = vadd.f32 %v355_v9, %v354_v53  ;;  %v363_v31 = vmul.f32 %v1406_v27, %v1123_v55  ;;  %v364_v42 = vmul.f32 %v1409_v60, %v1125_v56  ;;  %v365_v4 = vmul.f32 %v1412_v26, %v1127_v57 }
 0x11d   :  { %v475_v41 = vrot.slane %v474_v35, 2  ;;  %v652_v45 = vadd.f32 %v651_v43, %v650_v44  ;;  %v366_v5 = vsel %vm101_vm0, %v362_v29, 0.0  ;;  %v574_v21 = vadd.f32 %v573_v30, %v572_v11 }
 0x11e   :  { %v357_v15 = vrot.slane %v356_v49, 1  ;;  %v367_v10 = vsel %vm101_vm0, %v363_v31, 0.0  ;;  %v369_v48 = vsel %vm101_vm0, %v364_v42, 0.0  ;;  %v371_v38 = vsel %vm101_vm0, %v365_v4, 0.0 }
 0x11f   :  { %v476_v52 = vadd.f32 %v475_v41, %v474_v35  ;;  %v653_v53 = vrot.slane %v652_v45, 4  ;;  %v368_v17 = vadd.f32 %v367_v10, %v366_v5  ;;  %v575_v2 = vrot.slane %v574_v21, 2 }
 0x120   :  { %v358_v1 = vadd.f32 %v357_v15, %v356_v49  ;;  %v482_v23 = vmul.f32 %v1399_v0, %v1146_v16  ;;  %v483_v43 = vmul.f32 %v1406_v27, %v1148_v18  ;;  %v484_v29 = vmul.f32 %v1409_v60, %v1150_v19 }
 0x121   :  { %v477_v9 = vrot.slane %v476_v52, 1  ;;  %v654_v44 = vadd.f32 %v653_v53, %v652_v45  ;;  %v370_v11 = vadd.f32 %v369_v48, %v368_v17  ;;  %v576_v35 = vadd.f32 %v575_v2, %v574_v21 }
 0x122   :  { %v359_v30 = vmul.f32 10.0, %v358_v1  ;;  %v485_v31 = vmul.f32 %v1412_v26, %v1152_v20  ;;  %v486_v49 = vsel %vm101_vm0, %v482_v23, 0.0  ;;  %v487_v5 = vsel %vm101_vm0, %v483_v43, 0.0 }
 0x123   :  { %v478_v42 = vadd.f32 %v477_v9, %v476_v52  ;;  %v655_v41 = vrot.slane %v654_v44, 2  ;;  %v372_v4 = vadd.f32 %v371_v38, %v370_v11  ;;  %955 = vpow2.f32 %v1362_v3 }
 0x124   :  { %v360_v15 = vmul.f32 1.442695, %v359_v30  ;;  %v577_v45 = vrot.slane %v576_v35, 1  ;;  %v488_v10 = vadd.f32 %v487_v5, %v486_v49  ;;  %v489_v21 = vsel %vm101_vm0, %v484_v29, 0.0 }
 0x125   :  { %v479_v48 = vmul.f32 10.0, %v478_v42  ;;  %v1437_v53 = vadd.f32 %v655_v41, %v654_v44  ;;  %v373_v17 = vrot.slane %v372_v4, 4  ;;  %957 = vpow2.f32 %v1376_v39 }
 0x126   :  { %v578_v1 = vadd.f32 %v577_v45, %v576_v35  ;;  %v490_v2 = vadd.f32 %v489_v21, %v488_v10  ;;  %v582_v52 = vmul.f32 %v1399_v0, %v1181_v59  ;;  %v491_v3 = vsel %vm101_vm0, %v485_v31, 0.0 }
 0x127   :  { %v480_v38 = vmul.f32 1.442695, %v479_v48  ;;  %v374_v23 = vadd.f32 %v373_v17, %v372_v4  ;;  %v583_v43 = vmul.f32 %v1406_v27, %v1184_v61  ;;  %v584_v11 = vmul.f32 %v1409_v60, %v1187_v62 }
 0x128   :  { %v579_v9 = vmul.f32 10.0, %v578_v1  ;;  %v492_v44 = vadd.f32 %v491_v3, %v490_v2  ;;  %v585_v39 = vmul.f32 %v1412_v26, %v1189_v63  ;;  %959 = vpow2.f32 %v360_v15 }
 0x129   :  { %v375_v30 = vrot.slane %v374_v23, 2  ;;  %v586_v35 = vsel %vm101_vm0, %v582_v52, 0.0  ;;  %961 = vpow2.f32 %v480_v38  ;;  %v587_v42 = vsel %vm101_vm0, %v583_v43, 0.0  ;;  %v1463_v52 = vpop.trf.xlu0 }
 0x12a   :  { %v580_v49 = vmul.f32 1.442695, %v579_v9  ;;  %v493_v31 = vrot.slane %v492_v44, 4  ;;  %v588_v4 = vadd.f32 %v587_v42, %v586_v35  ;;  %v589_v5 = vsel %vm101_vm0, %v584_v11, 0.0  ;;  %1793 = vst [vmem:[#allocation11_spill] sm:$0xff] %v1463_v52 }
 0x12b   :  { %v376_v41 = vadd.f32 %v375_v30, %v374_v23  ;;  %v591_v45 = vsel %vm101_vm0, %v585_v39, 0.0  ;;  %v662_v15 = vmul.f32 %v1399_v0, %v1248_v32  ;;  %v663_v48 = vmul.f32 %v1406_v27, %v1251_v33 }
 0x12c   :  { %963 = vpow2.f32 %v580_v49  ;;  %v494_v10 = vadd.f32 %v493_v31, %v492_v44  ;;  %v590_v21 = vadd.f32 %v589_v5, %v588_v4  ;;  %v664_v1 = vmul.f32 %v1409_v60, %v1256_v36 }
 0x12d   :  { %v377_v17 = vrot.slane %v376_v41, 1  ;;  %v665_v2 = vmul.f32 %v1412_v26, %v1259_v37  ;;  %v1465_v38 = vpop.eup %955  ;;  %v666_v3 = vsel %vm101_vm0, %v662_v15, 0.0  ;;  %v667_v43 = vsel %vm101_vm0, %v663_v48, 0.0  ;;  %v1484_v29 = vpop.trf.xlu0 }
 0x12e   :  { %v495_v23 = vrot.slane %v494_v10, 2  ;;  %v722_v9 = vmul.f32 %v1399_v0, %v1334_v7  ;;  %v592_v11 = vadd.f32 %v591_v45, %v590_v21  ;;  %v668_v39 = vadd.f32 %v667_v43, %v666_v3 }
 0x12f   :  { %v378_v44 = vadd.f32 %v377_v17, %v376_v41  ;;  %v669_v30 = vsel %vm101_vm0, %v664_v1, 0.0  ;;  %v1472_v35 = vpop.eup %957  ;;  %v671_v31 = vsel %vm101_vm0, %v665_v2, 0.0  ;;  %v723_v42 = vmul.f32 %v1406_v27, %v1337_v8 }
 0x130   :  { %v496_v49 = vadd.f32 %v495_v23, %v494_v10  ;;  %v724_v4 = vmul.f32 %v1409_v60, %v1340_v13  ;;  %v593_v15 = vrot.slane %v592_v11, 4  ;;  %v670_v48 = vadd.f32 %v669_v30, %v668_v39 }
 0x131   :  { %v379_v5 = vmul.f32 10.0, %v378_v44  ;;  %v725_v41 = vmul.f32 %v1412_v26, %v1343_v14  ;;  %v726_v17 = vsel %vm101_vm0, %v722_v9, 0.0  ;;  %v727_v21 = vsel %vm101_vm0, %v723_v42, 0.0 }
 0x132   :  { %v497_v45 = vrot.slane %v496_v49, 1  ;;  %v729_v10 = vsel %vm101_vm0, %v724_v4, 0.0  ;;  %v960_v1 = vpop.eup %959  ;;  %v594_v23 = vadd.f32 %v593_v15, %v592_v11  ;;  %v672_v3 = vadd.f32 %v671_v31, %v670_v48 }
 0x133   :  { %v380_v2 = vmul.f32 1.442695, %v379_v5  ;;  %v728_v43 = vadd.f32 %v727_v21, %v726_v17  ;;  %v962_v44 = vpop.eup %961  ;;  %v731_v39 = vsel %vm101_vm0, %v725_v41, 0.0  ;;  %v1794_v30 = vrot.slane %v1329_v40, 2 }
 0x134   :  { %v498_v6 = vadd.f32 %v497_v45, %v496_v49  ;;  %v261_v9 = vmul.f32 %v1463_v52, %v1463_v52  ;;  %v595_v42 = vrot.slane %v594_v23, 2  ;;  %v673_v4 = vrot.slane %v672_v3, 4 }
 0x135   :  { %v250_v25 = vadd.f32 %v1794_v30, %v1329_v40  ;;  %965 = vpow2.f32 %v380_v2  ;;  %v730_v5 = vadd.f32 %v729_v10, %v728_v43  ;;  %v262_v49 = vmul.f32 %v1484_v29, %v1484_v29 }
 0x136   :  { %v964_v11 = vpop.eup %963  ;;  %v499_v31 = vmul.f32 10.0, %v498_v6  ;;  %v266_v48 = vsel %vm101_vm0, %v261_v9, 0.0  ;;  %v596_v41 = vadd.f32 %v595_v42, %v594_v23  ;;  %v674_v45 = vadd.f32 %v673_v4, %v672_v3 }
 0x137   :  { %v251_v15 = vrot.slane %v250_v25, 1  ;;  %v732_v17 = vadd.f32 %v731_v39, %v730_v5  ;;  %v267_v40 = vadd.f32 %v266_v48, %v1349_v28  ;;  %v1795_v21 = vrot.slane %v1437_v53, 1 }
 0x138   :  { %v500_v30 = vmul.f32 1.442695, %v499_v31  ;;  %v268_v10 = vsel %vm101_vm0, %v262_v49, 0.0  ;;  %v597_v6 = vrot.slane %v596_v41, 1  ;;  %v675_v43 = vrot.slane %v674_v45, 2 }
 0x139   :  { %v658_v2 = vadd.f32 %v1795_v21, %v1437_v53  ;;  %v252_v52 = vadd.f32 %v251_v15, %v250_v25  ;;  %v733_v12 = vrot.slane %v732_v17, 4  ;;  %v269_v9 = vadd.f32 %v268_v10, %v267_v40 }
 0x13a   :  { %967 = vpow2.f32 %v500_v30  ;;  %v843_v23 = vadd.f32 %v1403_v50, %v1316_v24  ;;  %v851_v28 = vadd.f32 %v1465_v38, %v1321_v46  ;;  %v598_v3 = vadd.f32 %v597_v6, %v596_v41 }
 0x13b   :  { %v253_v26 = vmax.f32 %v252_v52, 1e-24  ;;  %v676_v39 = vadd.f32 %v675_v43, %v674_v45  ;;  %v734_v42 = vadd.f32 %v733_v12, %v732_v17  ;;  %v270_v53 = vrot.slane %v269_v9, 4 }
 0x13c   :  { %v844_v25 = vadd.f32 %v960_v1, %v843_v23  ;;  %v852_v4 = vadd.f32 %v962_v44, %v851_v28  ;;  %v860_v5 = vadd.f32 %v1472_v35, %v1325_v47  ;;  %v659_v31 = vmul.f32 10.0, %v658_v2 }
 0x13d   :  { %969 = vrsqrt.f32 %v253_v26  ;;  %v677_v15 = vrot.slane %v676_v39, 1  ;;  %v735_v48 = vrot.slane %v734_v42, 2  ;;  %v271_v52 = vadd.f32 %v270_v53, %v269_v9 }
 0x13e   :  { %v599_v49 = vmul.f32 10.0, %v598_v3  ;;  %v1506_v40 = vadd.f32 %v964_v11, %v860_v5  ;;  %v868_v24 = vadd.f32 %v1465_v38, %v1403_v50  ;;  %v877_v46 = vadd.f32 %v962_v44, %v960_v1 }
 0x13f   :  { %v966_v41 = vpop.eup %965  ;;  %v736_v12 = vadd.f32 %v735_v48, %v734_v42  ;;  %v272_v45 = vrot.slane %v271_v52, 2  ;;  %v678_v26 = vadd.f32 %v677_v15, %v676_v39  ;;  %v660_v30 = vmul.f32 1.442695, %v659_v31 }
 0x140   :  { %v1510_v17 = vadd.f32 %v966_v41, %v844_v25  ;;  %v1513_v21 = vadd.f32 %v1472_v35, %v868_v24  ;;  %v1515_v47 = vadd.f32 %v964_v11, %v877_v46  ;;  %v600_v43 = vmul.f32 1.442695, %v599_v49 }
 0x141   :  { %v273_v2 = vadd.f32 %v272_v45, %v271_v52  ;;  %v679_v10 = vmul.f32 10.0, %v678_v26  ;;  %v737_v6 = vrot.slane %v736_v12, 1  ;;  %971 = vpow2.f32 %v660_v30 }
 0x142   :  { %1796 = vst [vmem:[#allocation12_spill] sm:$0xff] %v1510_v17  ;;  %973 = vpow2.f32 %v600_v43 }
 0x143   :  { %v274_v9 = vrot.slane %v273_v2, 1  ;;  %v738_v23 = vadd.f32 %v737_v6, %v736_v12  ;;  %v680_v38 = vmul.f32 1.442695, %v679_v10 }
 0x144   :  { %v968_v50 = vpop.eup %967 }
 0x145   :  { %v1517_v1 = vadd.f32 %v274_v9, %v273_v2  ;;  %v739_v44 = vmul.f32 10.0, %v738_v23  ;;  %v1519_v28 = vadd.f32 %v968_v50, %v852_v4  ;;  %v1521_v35 = vadd.f32 %v968_v50, %v966_v41 }
 0x146   :  { %975 = vpow2.f32 %v680_v38 }
 0x147   :  { %1797 = vst [vmem:[#allocation13_spill] sm:$0xff] %v1519_v28  ;;  %v970_v3 = vpop.eup %969  ;;  %v1536_v4 = vmul.f32 1.442695, %v739_v44 }
 0x148   :  { %v1524_v11 = vmul.f32 %v970_v3, %v1253_v34  ;;  %v1527_v39 = vmul.f32 %v970_v3, %v1275_v58  ;;  %v1530_v42 = vmul.f32 %v970_v3, %v1291_v22  ;;  %v1533_v53 = vmul.f32 %v970_v3, %v1303_v51 }
 0x14a   :  { %1798 = vst [vmem:[#allocation14_spill] sm:$0xff] %v1527_v39  ;;  %1799 = vst [vmem:[#allocation15_spill] sm:$0xff] %v1530_v42  ;;  %v382_v5 = vmul.f32 %v1524_v11, %v1121_v54  ;;  %v383_v34 = vmul.f32 %v1527_v39, %v1123_v55  ;;  %v384_v58 = vmul.f32 %v1530_v42, %v1125_v56 }
 0x14b   :  { %1800 = vst [vmem:[#allocation16_spill] sm:$0xff] %v1533_v53  ;;  %v385_v22 = vmul.f32 %v1533_v53, %v1127_v57  ;;  %v502_v51 = vmul.f32 %v1524_v11, %v1146_v16  ;;  %v503_v31 = vmul.f32 %v1527_v39, %v1148_v18  ;;  %v504_v15 = vmul.f32 %v1530_v42, %v1150_v19  ;;  %v1572_v38 = vpop.eup %971 }
 0x14c   :  { %v505_v48 = vmul.f32 %v1533_v53, %v1152_v20  ;;  %v386_v52 = vsel %vm101_vm0, %v382_v5, 0.0  ;;  %v387_v49 = vsel %vm101_vm0, %v383_v34, 0.0  ;;  %v389_v24 = vsel %vm101_vm0, %v384_v58, 0.0  ;;  %v1578_v58 = vpop.eup %973 }
 0x14d   :  { %v391_v46 = vsel %vm101_vm0, %v385_v22, 0.0  ;;  %v388_v41 = vadd.f32 %v387_v49, %v386_v52  ;;  %v506_v12 = vsel %vm101_vm0, %v502_v51, 0.0  ;;  %v507_v45 = vsel %vm101_vm0, %v503_v31, 0.0 }
 0x14e   :  { %v509_v26 = vsel %vm101_vm0, %v504_v15, 0.0  ;;  %v508_v2 = vadd.f32 %v507_v45, %v506_v12  ;;  %v511_v30 = vsel %vm101_vm0, %v505_v48, 0.0  ;;  %v602_v10 = vmul.f32 %v1524_v11, %v1181_v59 }
 0x14f   :  { %v603_v6 = vmul.f32 %v1527_v39, %v1184_v61  ;;  %v390_v43 = vadd.f32 %v389_v24, %v388_v41  ;;  %v604_v9 = vmul.f32 %v1530_v42, %v1187_v62  ;;  %v605_v23 = vmul.f32 %v1533_v53, %v1189_v63 }
 0x150   :  { %v682_v50 = vmul.f32 %v1524_v11, %v1248_v32  ;;  %v510_v44 = vadd.f32 %v509_v26, %v508_v2  ;;  %v606_v3 = vsel %vm101_vm0, %v602_v10, 0.0  ;;  %v683_v34 = vmul.f32 %v1527_v39, %v1251_v33  ;;  %v1587_v41 = vpop.eup %975 }
 0x151   :  { %v607_v5 = vsel %vm101_vm0, %v603_v6, 0.0  ;;  %v392_v22 = vadd.f32 %v391_v46, %v390_v43  ;;  %v609_v31 = vsel %vm101_vm0, %v604_v9, 0.0  ;;  %v611_v15 = vsel %vm101_vm0, %v605_v23, 0.0 }
 0x152   :  { %v608_v51 = vadd.f32 %v607_v5, %v606_v3  ;;  %v512_v48 = vadd.f32 %v511_v30, %v510_v44  ;;  %v684_v52 = vmul.f32 %v1530_v42, %v1256_v36  ;;  %v685_v49 = vmul.f32 %v1533_v53, %v1259_v37 }
 0x153   :  { %v686_v24 = vsel %vm101_vm0, %v682_v50, 0.0  ;;  %v393_v12 = vrot.slane %v392_v22, 4  ;;  %v687_v46 = vsel %vm101_vm0, %v683_v34, 0.0  ;;  %v742_v26 = vmul.f32 %v1524_v11, %v1334_v7 }
 0x154   :  { %v610_v45 = vadd.f32 %v609_v31, %v608_v51  ;;  %v513_v2 = vrot.slane %v512_v48, 4  ;;  %v688_v10 = vadd.f32 %v687_v46, %v686_v24  ;;  %v689_v30 = vsel %vm101_vm0, %v684_v52, 0.0 }
 0x155   :  { %v691_v6 = vsel %vm101_vm0, %v685_v49, 0.0  ;;  %v394_v43 = vadd.f32 %v393_v12, %v392_v22  ;;  %v743_v23 = vmul.f32 %v1527_v39, %v1337_v8  ;;  %v744_v50 = vmul.f32 %v1530_v42, %v1340_v13 }
 0x156   :  { %v612_v9 = vadd.f32 %v611_v15, %v610_v45  ;;  %v514_v44 = vadd.f32 %v513_v2, %v512_v48  ;;  %v690_v3 = vadd.f32 %v689_v30, %v688_v10  ;;  %v745_v5 = vmul.f32 %v1533_v53, %v1343_v14 }
 0x157   :  { %v746_v34 = vsel %vm101_vm0, %v742_v26, 0.0  ;;  %v395_v51 = vrot.slane %v394_v43, 2  ;;  %v747_v52 = vsel %vm101_vm0, %v743_v23, 0.0  ;;  %v749_v22 = vsel %vm101_vm0, %v744_v50, 0.0 }
 0x158   :  { %v613_v31 = vrot.slane %v612_v9, 4  ;;  %v515_v15 = vrot.slane %v514_v44, 2  ;;  %v692_v49 = vadd.f32 %v691_v6, %v690_v3  ;;  %v748_v24 = vadd.f32 %v747_v52, %v746_v34  ;;  %v1801_v6 = vld [vmem:[#allocation10_spill] sm:$0xff] }
 0x159   :  { %v751_v12 = vsel %vm101_vm0, %v745_v5, 0.0  ;;  %v396_v45 = vadd.f32 %v395_v51, %v394_v43  ;;  %v782_v48 = vmul.f32 %v1524_v11, %v1399_v0  ;;  %v783_v2 = vmul.f32 %v1527_v39, %v1406_v27 }
 0x15a   :  { %v614_v46 = vadd.f32 %v613_v31, %v612_v9  ;;  %v516_v26 = vadd.f32 %v515_v15, %v514_v44  ;;  %v693_v10 = vrot.slane %v692_v49, 4  ;;  %v750_v30 = vadd.f32 %v749_v22, %v748_v24 }
 0x15b   :  { %v784_v23 = vmul.f32 %v1530_v42, %v1409_v60  ;;  %v397_v50 = vrot.slane %v396_v45, 1  ;;  %v785_v3 = vmul.f32 %v1533_v53, %v1801_v6  ;;  %v786_v43 = vsel %vm101_vm0, %v782_v48, 0.0 }
 0x15c   :  { %v615_v25 = vrot.slane %v614_v46, 2  ;;  %v517_v9 = vrot.slane %v516_v26, 1  ;;  %v694_v5 = vadd.f32 %v693_v10, %v692_v49  ;;  %v752_v34 = vadd.f32 %v751_v12, %v750_v30 }
 0x15d   :  { %v787_v51 = vsel %vm101_vm0, %v783_v2, 0.0  ;;  %v398_v31 = vadd.f32 %v397_v50, %v396_v45  ;;  %v789_v22 = vsel %vm101_vm0, %v784_v23, 0.0  ;;  %v791_v17 = vsel %vm101_vm0, %v785_v3, 0.0 }
 0x15e   :  { %v616_v52 = vadd.f32 %v615_v25, %v614_v46  ;;  %v788_v44 = vadd.f32 %v787_v51, %v786_v43  ;;  %v518_v15 = vadd.f32 %v517_v9, %v516_v26  ;;  %v695_v24 = vrot.slane %v694_v5, 2 }
 0x15f   :  { %v753_v28 = vrot.slane %v752_v34, 4  ;;  %v399_v42 = vmul.f32 10.0, %v398_v31  ;;  %v1802_v48 = vmax.f32 %v1517_v1, 1e-24  ;;  %v1621_v46 = vadd.f32 %v1578_v58, %v1506_v40 }
 0x160   :  { %v617_v39 = vrot.slane %v616_v52, 1  ;;  %v790_v53 = vadd.f32 %v789_v22, %v788_v44  ;;  %v519_v49 = vmul.f32 10.0, %v518_v15  ;;  %v696_v12 = vadd.f32 %v695_v24, %v694_v5  ;;  %v1805_v22 = vld [vmem:[#allocation11_spill] sm:$0xff] }
 0x161   :  { %977 = vrsqrt.f32 %v1802_v48  ;;  %v754_v10 = vadd.f32 %v753_v28, %v752_v34  ;;  %v870_v30 = vadd.f32 %v1572_v38, %v1513_v21  ;;  %v400_v50 = vmul.f32 1.442695, %v399_v42 }
 0x162   :  { %979 = vpow2.f32 %v1536_v4  ;;  %v792_v25 = vadd.f32 %v791_v17, %v790_v53  ;;  %v618_v45 = vadd.f32 %v617_v39, %v616_v52  ;;  %v697_v26 = vrot.slane %v696_v12, 1  ;;  %v1803_v52 = vld [vmem:[#allocation8_spill] sm:$0xff] }
 0x163   :  { %v755_v2 = vrot.slane %v754_v10, 2  ;;  %v879_v3 = vadd.f32 %v1572_v38, %v1515_v47  ;;  %v520_v28 = vmul.f32 1.442695, %v519_v49  ;;  %v1628_v17 = vadd.f32 %v1587_v41, %v870_v30 }
 0x164   :  { %v793_v23 = vrot.slane %v792_v25, 4  ;;  %v619_v1 = vmul.f32 10.0, %v618_v45  ;;  %v698_v43 = vadd.f32 %v697_v26, %v696_v12  ;;  %v887_v53 = vadd.f32 %v1578_v58, %v1521_v35  ;;  %v1804_v35 = vld [vmem:[#allocation9_spill] sm:$0xff] }
 0x165   :  { %v756_v4 = vadd.f32 %v755_v2, %v754_v10  ;;  %981 = vpow2.f32 %v400_v50 }
 0x166   :  { %v794_v39 = vadd.f32 %v793_v23, %v792_v25  ;;  %v620_v40 = vmul.f32 1.442695, %v619_v1  ;;  %v699_v9 = vmul.f32 10.0, %v698_v43  ;;  %v1633_v42 = vadd.f32 %v1587_v41, %v887_v53 }
 0x167   :  { %v757_v5 = vrot.slane %v756_v4, 1  ;;  %983 = vpow2.f32 %v520_v28 }
 0x168   :  { %v795_v21 = vrot.slane %v794_v39, 2  ;;  %v700_v47 = vmul.f32 1.442695, %v699_v9  ;;  %985 = vpow2.f32 %v620_v40 }
 0x169   :  { %v758_v38 = vadd.f32 %v757_v5, %v756_v4 }
 0x16a   :  { %v1635_v51 = vadd.f32 %v795_v21, %v794_v39  ;;  %987 = vpow2.f32 %v700_v47 }
 0x16b   :  { %v978_v34 = vpop.eup %977  ;;  %v1651_v24 = vmul.f32 10.0, %v758_v38 }
 0x16c   :  { %v1637_v31 = vpop.eup %979  ;;  %v1640_v44 = vmul.f32 %v978_v34, %v1803_v52  ;;  %v1643_v58 = vmul.f32 %v978_v34, %v1804_v35  ;;  %v1646_v15 = vmul.f32 %v978_v34, %v1805_v22  ;;  %v1649_v41 = vmul.f32 %v978_v34, %v1484_v29 }
 0x16d   :  { %v797_v48 = vrot.slane %v1635_v51, 1  ;;  %v1655_v49 = vadd.f32 %v1637_v31, %v879_v3 }
 0x16e   :  { %v402_v12 = vmul.f32 %v1640_v44, %v1121_v54  ;;  %v403_v10 = vmul.f32 %v1643_v58, %v1123_v55  ;;  %v404_v25 = vmul.f32 %v1646_v15, %v1125_v56  ;;  %v405_v29 = vmul.f32 %v1649_v41, %v1127_v57 }
 0x16f   :  { %v522_v45 = vmul.f32 %v1640_v44, %v1146_v16  ;;  %v523_v2 = vmul.f32 %v1643_v58, %v1148_v18  ;;  %v524_v26 = vmul.f32 %v1646_v15, %v1150_v19  ;;  %v525_v54 = vmul.f32 %v1649_v41, %v1152_v20  ;;  %v1685_v28 = vpop.eup %981 }
 0x170   :  { %v406_v55 = vsel %vm101_vm0, %v402_v12, 0.0  ;;  %v407_v30 = vsel %vm101_vm0, %v403_v10, 0.0  ;;  %v409_v56 = vsel %vm101_vm0, %v404_v25, 0.0  ;;  %v411_v57 = vsel %vm101_vm0, %v405_v29, 0.0 }
 0x171   :  { %v408_v23 = vadd.f32 %v407_v30, %v406_v55  ;;  %v526_v16 = vsel %vm101_vm0, %v522_v45, 0.0  ;;  %v527_v50 = vsel %vm101_vm0, %v523_v2, 0.0  ;;  %v529_v18 = vsel %vm101_vm0, %v524_v26, 0.0  ;;  %v1693_v53 = vpop.eup %983 }
 0x172   :  { %v528_v1 = vadd.f32 %v527_v50, %v526_v16  ;;  %v531_v19 = vsel %vm101_vm0, %v525_v54, 0.0  ;;  %v622_v20 = vmul.f32 %v1640_v44, %v1181_v59  ;;  %v623_v3 = vmul.f32 %v1643_v58, %v1184_v61  ;;  %v1699_v21 = vpop.eup %985 }
 0x173   :  { %v410_v43 = vadd.f32 %v409_v56, %v408_v23  ;;  %v624_v4 = vmul.f32 %v1646_v15, %v1187_v62  ;;  %v625_v39 = vmul.f32 %v1649_v41, %v1189_v63  ;;  %v702_v40 = vmul.f32 %v1640_v44, %v1248_v32 }
 0x174   :  { %v530_v9 = vadd.f32 %v529_v18, %v528_v1  ;;  %v626_v59 = vsel %vm101_vm0, %v622_v20, 0.0  ;;  %v627_v5 = vsel %vm101_vm0, %v623_v3, 0.0  ;;  %v703_v61 = vmul.f32 %v1643_v58, %v1251_v33  ;;  %v1708_v22 = vpop.eup %987 }
 0x175   :  { %v412_v47 = vadd.f32 %v411_v57, %v410_v43  ;;  %v628_v62 = vadd.f32 %v627_v5, %v626_v59  ;;  %v629_v38 = vsel %vm101_vm0, %v624_v4, 0.0  ;;  %v631_v63 = vsel %vm101_vm0, %v625_v39, 0.0 }
 0x176   :  { %v532_v34 = vadd.f32 %v531_v19, %v530_v9  ;;  %v704_v32 = vmul.f32 %v1646_v15, %v1256_v36  ;;  %v705_v52 = vmul.f32 %v1649_v41, %v1259_v37  ;;  %v706_v35 = vsel %vm101_vm0, %v702_v40, 0.0 }
 0x177   :  { %v413_v33 = vrot.slane %v412_v47, 4  ;;  %v630_v12 = vadd.f32 %v629_v38, %v628_v62  ;;  %v707_v10 = vsel %vm101_vm0, %v703_v61, 0.0  ;;  %v762_v25 = vmul.f32 %v1640_v44, %v1334_v7 }
 0x178   :  { %v533_v29 = vrot.slane %v532_v34, 4  ;;  %v708_v45 = vadd.f32 %v707_v10, %v706_v35  ;;  %v709_v2 = vsel %vm101_vm0, %v704_v32, 0.0  ;;  %v711_v36 = vsel %vm101_vm0, %v705_v52, 0.0 }
 0x179   :  { %v414_v26 = vadd.f32 %v413_v33, %v412_v47  ;;  %v632_v54 = vadd.f32 %v631_v63, %v630_v12  ;;  %v763_v37 = vmul.f32 %v1643_v58, %v1337_v8  ;;  %v764_v55 = vmul.f32 %v1646_v15, %v1340_v13 }
 0x17a   :  { %v534_v30 = vadd.f32 %v533_v29, %v532_v34  ;;  %v710_v56 = vadd.f32 %v709_v2, %v708_v45  ;;  %v765_v57 = vmul.f32 %v1649_v41, %v1343_v14  ;;  %v766_v7 = vsel %vm101_vm0, %v762_v25, 0.0  ;;  %v1806_v29 = vld [vmem:[#allocation14_spill] sm:$0xff] }
 0x17b   :  { %v415_v23 = vrot.slane %v414_v26, 2  ;;  %v633_v16 = vrot.slane %v632_v54, 4  ;;  %v767_v50 = vsel %vm101_vm0, %v763_v37, 0.0  ;;  %v769_v18 = vsel %vm101_vm0, %v764_v55, 0.0  ;;  %v1808_v37 = vld [vmem:[#allocation16_spill] sm:$0xff] }
 0x17c   :  { %v535_v1 = vrot.slane %v534_v30, 2  ;;  %v712_v19 = vadd.f32 %v711_v36, %v710_v56  ;;  %v768_v20 = vadd.f32 %v767_v50, %v766_v7  ;;  %v771_v8 = vsel %vm101_vm0, %v765_v57, 0.0 }
 0x17d   :  { %v416_v3 = vadd.f32 %v415_v23, %v414_v26  ;;  %v634_v13 = vadd.f32 %v633_v16, %v632_v54  ;;  %v802_v43 = vmul.f32 %v1640_v44, %v1399_v0  ;;  %v803_v14 = vmul.f32 %v1643_v58, %v1406_v27  ;;  %v1807_v26 = vld [vmem:[#allocation15_spill] sm:$0xff] }
 0x17e   :  { %v536_v4 = vadd.f32 %v535_v1, %v534_v30  ;;  %v713_v39 = vrot.slane %v712_v19, 4  ;;  %v770_v40 = vadd.f32 %v769_v18, %v768_v20  ;;  %v804_v9 = vmul.f32 %v1646_v15, %v1409_v60 }
 0x17f   :  { %v417_v59 = vrot.slane %v416_v3, 1  ;;  %v635_v5 = vrot.slane %v634_v13, 2  ;;  %v805_v61 = vmul.f32 %v1649_v41, %v1801_v6  ;;  %v806_v47 = vsel %vm101_vm0, %v802_v43, 0.0 }
 0x180   :  { %v537_v62 = vrot.slane %v536_v4, 1  ;;  %v714_v38 = vadd.f32 %v713_v39, %v712_v19  ;;  %v772_v63 = vadd.f32 %v771_v8, %v770_v40  ;;  %v807_v0 = vsel %vm101_vm0, %v803_v14, 0.0 }
 0x181   :  { %v418_v34 = vadd.f32 %v417_v59, %v416_v3  ;;  %v636_v27 = vadd.f32 %v635_v5, %v634_v13  ;;  %v808_v32 = vadd.f32 %v807_v0, %v806_v47  ;;  %v809_v52 = vsel %vm101_vm0, %v804_v9, 0.0 }
 0x182   :  { %v538_v35 = vadd.f32 %v537_v62, %v536_v4  ;;  %v715_v33 = vrot.slane %v714_v38, 2  ;;  %v773_v60 = vrot.slane %v772_v63, 4  ;;  %v811_v12 = vsel %vm101_vm0, %v805_v61, 0.0 }
 0x183   :  { %v637_v10 = vrot.slane %v636_v27, 1  ;;  %v810_v25 = vadd.f32 %v809_v52, %v808_v32  ;;  %v822_v6 = vmul.f32 %v1640_v44, %v1524_v11  ;;  %v823_v45 = vmul.f32 %v1643_v58, %v1806_v29 }
 0x184   :  { %v716_v2 = vadd.f32 %v715_v33, %v714_v38  ;;  %v774_v36 = vadd.f32 %v773_v60, %v772_v63  ;;  %v824_v54 = vmul.f32 %v1646_v15, %v1807_v26  ;;  %v825_v55 = vmul.f32 %v1649_v41, %v1808_v37  ;;  %v1810_v63 = vld [vmem:[#allocation13_spill] sm:$0xff] }
 0x185   :  { %v812_v30 = vadd.f32 %v811_v12, %v810_v25  ;;  %v826_v56 = vsel %vm101_vm0, %v822_v6, 0.0  ;;  %v827_v57 = vsel %vm101_vm0, %v823_v45, 0.0  ;;  %v419_v7 = vmul.f32 10.0, %v418_v34 }
 0x186   :  { %v775_v23 = vrot.slane %v774_v36, 2  ;;  %v828_v16 = vadd.f32 %v827_v57, %v826_v56  ;;  %v829_v11 = vsel %vm101_vm0, %v824_v54, 0.0  ;;  %v831_v44 = vsel %vm101_vm0, %v825_v55, 0.0 }
 0x187   :  { %v813_v58 = vrot.slane %v812_v30, 4  ;;  %v420_v50 = vmul.f32 1.442695, %v419_v7  ;;  %v539_v18 = vmul.f32 10.0, %v538_v35  ;;  %v638_v1 = vadd.f32 %v637_v10, %v636_v27 }
 0x188   :  { %v830_v15 = vadd.f32 %v829_v11, %v828_v16  ;;  %v717_v19 = vrot.slane %v716_v2, 1  ;;  %v760_v41 = vmul.f32 1.442695, %v1651_v24  ;;  %v776_v20 = vadd.f32 %v775_v23, %v774_v36  ;;  %v1809_v24 = vld [vmem:[#allocation12_spill] sm:$0xff] }
 0x189   :  { %v814_v8 = vadd.f32 %v813_v58, %v812_v30  ;;  %989 = vpow2.f32 %v420_v50  ;;  %v540_v3 = vmul.f32 1.442695, %v539_v18  ;;  %v639_v13 = vmul.f32 10.0, %v638_v1 }
 0x18a   :  { %v832_v43 = vadd.f32 %v831_v44, %v830_v15  ;;  %v718_v14 = vadd.f32 %v717_v19, %v716_v2  ;;  %991 = vpow2.f32 %v760_v41  ;;  %v777_v4 = vrot.slane %v776_v20, 1 }
 0x18b   :  { %993 = vpow2.f32 %v540_v3  ;;  %v640_v39 = vmul.f32 1.442695, %v639_v13  ;;  %v798_v40 = vadd.f32 %v797_v48, %v1635_v51  ;;  %v815_v9 = vrot.slane %v814_v8, 2 }
 0x18c   :  { %v833_v59 = vrot.slane %v832_v43, 4  ;;  %v719_v5 = vmul.f32 10.0, %v718_v14  ;;  %v778_v61 = vadd.f32 %v777_v4, %v776_v20  ;;  %v846_v47 = vadd.f32 %v1685_v28, %v1809_v24 }
 0x18d   :  { %995 = vpow2.f32 %v640_v39  ;;  %v799_v62 = vmul.f32 10.0, %v798_v40  ;;  %v816_v38 = vadd.f32 %v815_v9, %v814_v8  ;;  %v854_v0 = vadd.f32 %v1693_v53, %v1810_v63 }
 0x18e   :  { %v720_v34 = vmul.f32 1.442695, %v719_v5  ;;  %v779_v27 = vmul.f32 10.0, %v778_v61  ;;  %v834_v32 = vadd.f32 %v833_v59, %v832_v43  ;;  %v863_v52 = vadd.f32 %v1699_v21, %v1621_v46 }
 0x18f   :  { %v800_v51 = vmul.f32 1.442695, %v799_v62  ;;  %v817_v48 = vrot.slane %v816_v38, 1  ;;  %v872_v35 = vadd.f32 %v1708_v22, %v1628_v17  ;;  %v889_v33 = vadd.f32 %v1637_v31, %v1633_v42 }
 0x190   :  { %997 = vpow2.f32 %v720_v34  ;;  %v780_v60 = vmul.f32 1.442695, %v779_v27  ;;  %v835_v12 = vrot.slane %v834_v32, 2  ;;  %v895_v10 = vadd.f32 %v1693_v53, %v1685_v28 }
 0x191   :  { %999 = vpow2.f32 %v800_v51  ;;  %v818_v25 = vadd.f32 %v817_v48, %v816_v38 }
 0x192   :  { %1001 = vpow2.f32 %v780_v60  ;;  %v836_v6 = vadd.f32 %v835_v12, %v834_v32  ;;  %v896_v46 = vadd.f32 %v1699_v21, %v895_v10 }
 0x193   :  { %v990_v29 = vpop.eup %989  ;;  %v819_v45 = vmul.f32 10.0, %v818_v25 }
 0x194   :  { %v992_v2 = vpop.eup %991  ;;  %v837_v36 = vrot.slane %v836_v6, 1  ;;  %v847_v17 = vadd.f32 %v990_v29, %v846_v47  ;;  %v897_v26 = vadd.f32 %v1708_v22, %v896_v46 }
 0x195   :  { %v994_v42 = vpop.eup %993  ;;  %v820_v31 = vmul.f32 1.442695, %v819_v45  ;;  %v881_v54 = vadd.f32 %v992_v2, %v1655_v49 }
 0x196   :  { %v838_v37 = vadd.f32 %v837_v36, %v836_v6  ;;  %1003 = vlog2.f32 %v847_v17  ;;  %v855_v28 = vadd.f32 %v994_v42, %v854_v0  ;;  %v898_v53 = vadd.f32 %v992_v2, %v897_v26 }
 0x197   :  { %v996_v55 = vpop.eup %995  ;;  %1005 = vpow2.f32 %v820_v31  ;;  %v904_v30 = vadd.f32 %v994_v42, %v990_v29 }
 0x198   :  { %v839_v56 = vmul.f32 10.0, %v838_v37  ;;  %1007 = vlog2.f32 %v855_v28  ;;  %v864_v21 = vadd.f32 %v996_v55, %v863_v52 }
 0x199   :  { %v905_v57 = vadd.f32 %v996_v55, %v904_v30 }
 0x19a   :  { %v998_v7 = vpop.eup %997  ;;  %v840_v23 = vmul.f32 1.442695, %v839_v56  ;;  %1009 = vlog2.f32 %v864_v21 }
 0x19b   :  { %v1000_v16 = vpop.eup %999  ;;  %v873_v22 = vadd.f32 %v998_v7, %v872_v35  ;;  %v906_v11 = vadd.f32 %v998_v7, %v905_v57 }
 0x19c   :  { %v1002_v44 = vpop.eup %1001  ;;  %1011 = vpow2.f32 %v840_v23  ;;  %v890_v49 = vadd.f32 %v1000_v16, %v889_v33  ;;  %v899_v58 = vadd.f32 %v1000_v16, %v898_v53 }
 0x19d   :  { %1013 = vlog2.f32 %v873_v22  ;;  %v882_v50 = vadd.f32 %v1002_v44, %v881_v54  ;;  %v907_v18 = vadd.f32 %v1002_v44, %v906_v11 }
 0x19f   :  { %1015 = vlog2.f32 %v882_v50 }
 0x1a0   :  { %v1004_v1 = vpop.eup %1003 }
 0x1a1   :  { %v1006_v15 = vpop.eup %1005  ;;  %v849_v19 = vmul.f32 0.6931472, %v1004_v1 }
 0x1a2   :  { %v1008_v41 = vpop.eup %1007  ;;  %v891_v20 = vadd.f32 %v1006_v15, %v890_v49  ;;  %v908_v8 = vadd.f32 %v1006_v15, %v907_v18 }
 0x1a3   :  { %v857_v3 = vmul.f32 0.6931472, %v1008_v41 }
 0x1a4   :  { %v1010_v13 = vpop.eup %1009  ;;  %1017 = vlog2.f32 %v891_v20 }
 0x1a5   :  { %v858_v43 = vadd.f32 %v857_v3, %v849_v19  ;;  %v866_v14 = vmul.f32 0.6931472, %v1010_v13 }
 0x1a6   :  { %v1012_v4 = vpop.eup %1011 }
 0x1a7   :  { %v1014_v39 = vpop.eup %1013  ;;  %v867_v40 = vadd.f32 %v866_v14, %v858_v43  ;;  %v900_v9 = vadd.f32 %v1012_v4, %v899_v58  ;;  %v909_v59 = vadd.f32 %v1012_v4, %v908_v8 }
 0x1a8   :  { %v875_v5 = vmul.f32 0.6931472, %v1014_v39 }
 0x1a9   :  { %v1016_v61 = vpop.eup %1015  ;;  %1019 = vlog2.f32 %v900_v9 }
 0x1aa   :  { %v876_v24 = vadd.f32 %v875_v5, %v867_v40  ;;  %v884_v47 = vmul.f32 0.6931472, %v1016_v61  ;;  %1021 = vlog2.f32 %v909_v59 }
 0x1ac   :  { %v885_v62 = vadd.f32 %v884_v47, %v876_v24 }
 0x1ae   :  { %v1018_v38 = vpop.eup %1017 }
 0x1af   :  { %v893_v63 = vmul.f32 0.6931472, %v1018_v38 }
 0x1b1   :  { %v894_v0 = vadd.f32 %v893_v63, %v885_v62 }
 0x1b3   :  { %v1020_v34 = vpop.eup %1019 }
 0x1b4   :  { %v1022_v27 = vpop.eup %1021  ;;  %v902_v32 = vmul.f32 0.6931472, %v1020_v34 }
 0x1b5   :  { %v911_v51 = vmul.f32 0.6931472, %v1022_v27 }
 0x1b6   :  { %v903_v52 = vadd.f32 %v902_v32, %v894_v0 }
 0x1b8   :  { %v912_v48 = vadd.f32 %v911_v51, %v903_v52 }
 0x1ba   :  { %v913_v35 = vmul.f32 0.07341405, %v912_v48 }
 0x1bc   :  { %915 = vst.msk [vmem:[#allocation5] sm:$0x1] %vm914_vm1, %v913_v35 }
 0x1bd   :  { %1056 = shalt.err (!%p1053_p12)
}
 0x1be   :  { %s1057_s23 = scalar_lea.hbm %s1781_s1, 16 }
 0x1bf   :  { %p1058_p13 = scmp.ne.s32.totalorder %s1781_s1, %s1057_s23  ;;  %p1061_p0 = scmp.lt.u32.totalorder %s1057_s23, %s1781_s1 }
 0x1c1   :  { %p1063_p1 = pnand %p1061_p0, %p1058_p13 }
 0x1c3   :  { %1066 = shalt.err (!%p1063_p1)
}
 0x1c4   :  { %925 = dma.vmem_to_hbm [thread:$0]  %s923_s18, 16, %s1781_s1, [#allocation4]  }
 0x1c5   :  { %1069 = dma.done.wait [#allocation4], 16  }
 0x1c6   :  { %1070 = vsyncadd [#allocation4], 4294967280 }
 0x1c7   :  { %929 = vsyncpa [#allocation3], 1 }
 0x1c8   :  { %930 = vsyncpa [#allocation4], 1 }

</bundles_post_ra>
